<compile_context>
chip_gen: v6e
topology: v6e:2x2x1
jax: 0.10.0
libtpu: 0.0.40
codegen_flags: <defaults>
</compile_context>

<pallas_src>
import jax
import jax.numpy as jnp
from jax.experimental import pallas as pl
from jax.experimental.pallas import tpu as pltpu

C_IN = 2048   # resnet feature channels (Linear in_features)
C_OUT = 256   # Linear out_features


def _encoder_head_kernel(x_ref, w_ref, b_ref, o_ref):
    # x_ref: [TM, S, TC]        (native dtype, channels-last)
    # w_ref: [C_IN, C_OUT]      (resident in VMEM for the whole grid)
    # b_ref: [1, C_OUT] f32     (resident)
    # o_ref: [TM, C_OUT] f32    (resident across the channel-reduction axis)
    k = pl.program_id(1)
    tc = x_ref.shape[-1]

    @pl.when(k == 0)
    def _init():
        o_ref[...] = jnp.zeros_like(o_ref)

    # AdaptiveMaxPool2d(1) == global max over spatial positions (sublane reduce).
    pooled = jnp.max(x_ref[...], axis=1)                       # [TM, TC]

    # Partial Linear over this channel block, sliced from the resident weight.
    start = pl.multiple_of(k * tc, tc)
    w_blk = w_ref[pl.ds(start, tc), :]                         # [TC, C_OUT]
    o_ref[...] += jnp.dot(pooled, w_blk, preferred_element_type=jnp.float32)

    @pl.when(k == pl.num_programs(1) - 1)
    def _finalize():
        o_ref[...] += b_ref[...]


def encoder_head(x_nhwc, weight, bias, *, tm=None, tc=None):
    """Encoder head (resnet branch).

    x_nhwc: [N, H, W, 2048] backbone features, channels-last (native dtype is
            streamed as-is; no extra cast/transpose HBM pass).
    weight: Linear weight, either nn.Linear layout [256, 2048] or pre-transposed
            [2048, 256] (shape-checked; transposed internally if needed).
    bias:   [256]
    Returns [N, 256] float32.
    """
    n, h, w, c = x_nhwc.shape
    assert c == C_IN, f"expected {C_IN} channels, got {c}"
    s = h * w

    # Accept both weight layouts; assert so a wrong shape fails loudly.
    if weight.shape == (C_OUT, C_IN):
        weight = weight.T
    assert weight.shape == (C_IN, C_OUT), f"bad weight shape {weight.shape}"
    assert bias.shape == (C_OUT,), f"bad bias shape {bias.shape}"

    x_nsc = x_nhwc.reshape(n, s, c)               # free view of contiguous NHWC
    w2d = weight.astype(x_nsc.dtype)              # matmul operand dtype = input dtype
    b2d = bias.astype(jnp.float32).reshape(1, C_OUT)

    # ---- tile selection ----
    if tm is None:
        if n <= 16:
            tm = n                                # one-shot over the batch
        else:
            # >= 2 batch blocks (v7x megacore), 8-aligned, capped at 128 rows.
            tm = min(128, -(-(n // 2) // 8) * 8)
    if tc is None:
        tc = C_IN if n <= 16 else 128             # reduction block on channels
    assert C_IN % tc == 0 and tc % 128 == 0

    grid = (pl.cdiv(n, tm), C_IN // tc)

    # ---- padded VMEM footprint -> explicit limit ----
    itemsize = jnp.dtype(x_nsc.dtype).itemsize
    s_pad = -(-s // 8) * 8                        # sublane pad of spatial axis
    tm_pad = max(-(-tm // 8) * 8, 8)
    vmem_bytes = (2 * tm * s_pad * tc * itemsize      # x, double-buffered
                  + 2 * C_IN * C_OUT * itemsize       # resident weight (2 bufs worst case)
                  + 2 * tm_pad * C_OUT * 4            # output, double-buffered
                  + 2 * 8 * C_OUT * 4)                # bias
    vmem_limit = min(64 * 1024 * 1024,
                     max(32 * 1024 * 1024, int(1.5 * vmem_bytes)))

    return pl.pallas_call(
        _encoder_head_kernel,
        out_shape=jax.ShapeDtypeStruct((n, C_OUT), jnp.float32),
        grid_spec=pltpu.PrefetchScalarGridSpec(
            num_scalar_prefetch=0,
            grid=grid,
            in_specs=[
                # x: batch block i, full spatial extent, channel block k.
                pl.BlockSpec((tm, s, tc), lambda i, k: (i, 0, k)),
                # weight: full array, resident (constant index map).
                pl.BlockSpec((C_IN, C_OUT), lambda i, k: (0, 0)),
                # bias: resident.
                pl.BlockSpec((1, C_OUT), lambda i, k: (0, 0)),
            ],
            # Output block fixed along the channel axis -> accumulate in place.
            out_specs=pl.BlockSpec((tm, C_OUT), lambda i, k: (i, 0)),
        ),
        compiler_params=pltpu.CompilerParams(
            dimension_semantics=("parallel", "arbitrary"),
            vmem_limit_bytes=vmem_limit),
    )(x_nsc, w2d, b2d)


if __name__ == "__main__":
    key = jax.random.PRNGKey(0)
    kx, kw, kb = jax.random.split(key, 3)

    # Small synthetic channels-last feature map standing in for body(x).
    # TODO(synk): the torchvision `body` backbone (and the inception / vgg /
    # vit Encoder branches) are external models and are not re-implemented
    # here; only the resnet head is kernelized.
    N, H, W = 2, 4, 4
    x = jax.random.normal(kx, (N, H, W, C_IN), dtype=jnp.float32)

    # nn.Linear(2048, 256) default init, in PyTorch's [out, in] weight layout.
    bound = 1.0 / jnp.sqrt(jnp.float32(C_IN))
    weight = jax.random.uniform(kw, (C_OUT, C_IN), jnp.float32, -bound, bound)
    bias = jax.random.uniform(kb, (C_OUT,), jnp.float32, -bound, bound)

    out = jax.block_until_ready(encoder_head(x, weight, bias))

    # Pure-f32 reference: global max-pool over spatial -> flatten -> Linear.
    pooled_ref = jnp.max(x.reshape(N, H * W, C_IN), axis=1)
    ref = jnp.dot(pooled_ref, weight.T,
                  precision=jax.lax.Precision.HIGHEST) + bias

    assert out.shape == (N, C_OUT)
    assert jnp.allclose(out, ref, atol=5e-3, rtol=5e-3), (
        float(jnp.max(jnp.abs(out - ref))))

    print("KERNEL_OK")
</pallas_src>

<mosaic_0001>
module attributes {stable_mosaic.version = 11 : i64} {
  func.func @_encoder_head_kernel(%arg0: i32, %arg1: i32, %arg2: memref<2x16x2048xf32, #tpu.memory_space<vmem>>, %arg3: memref<2048x256xf32, #tpu.memory_space<vmem>>, %arg4: memref<1x256xf32, #tpu.memory_space<vmem>>, %arg5: memref<2x256xf32, #tpu.memory_space<vmem>>) attributes {dimension_semantics = [#tpu.dimension_semantics<parallel>, #tpu.dimension_semantics<arbitrary>], iteration_bounds = array<i64: 1, 1>, scalar_prefetch = 0 : i64, scratch_operands = 0 : i64, tpu.core_type = #tpu.core_type<tc>, window_params = [{transform_indices = @transform_0, window_bounds = array<i64: 2, 16, 2048>}, {pipeline_mode = #tpu.pipeline_mode<synchronous>, transform_indices = @transform_1, window_bounds = array<i64: 2048, 256>}, {pipeline_mode = #tpu.pipeline_mode<synchronous>, transform_indices = @transform_2, window_bounds = array<i64: 1, 256>}, {transform_indices = @transform_3, window_bounds = array<i64: 2, 256>}]} {
    %c0_i32 = arith.constant 0 : i32
    %0 = arith.cmpi eq, %arg1, %c0_i32 : i32
    %1 = arith.extui %0 : i1 to i32
    %c0_i32_0 = arith.constant 0 : i32
    %2 = arith.cmpi ne, %1, %c0_i32_0 : i32
    scf.if %2 {
      %cst_11 = arith.constant 0.000000e+00 : f32
      %16 = vector.broadcast %cst_11 : f32 to vector<2x256xf32>
      %c0_12 = arith.constant 0 : index
      %c0_13 = arith.constant 0 : index
      %17 = vector.load %arg5[%c0_12, %c0_13] : memref<2x256xf32, #tpu.memory_space<vmem>>, vector<2x256xf32>
      tpu.vector_store %arg5[%c0_12, %c0_13], %16 {strides = array<i32>} : memref<2x256xf32, #tpu.memory_space<vmem>>, vector<2x256xf32>,
    } else {
    }
    %c0 = arith.constant 0 : index
    %c0_1 = arith.constant 0 : index
    %c0_2 = arith.constant 0 : index
    %3 = vector.load %arg2[%c0, %c0_1, %c0_2] : memref<2x16x2048xf32, #tpu.memory_space<vmem>>, vector<2x16x2048xf32>
    %cst = arith.constant dense<0xFF800000> : vector<2x2048xf32>
    %4 = vector.multi_reduction <maximumf>, %3, %cst [1] : vector<2x16x2048xf32> to vector<2x2048xf32>
    %c2048_i32 = arith.constant 2048 : i32
    %5 = arith.muli %arg1, %c2048_i32 : i32
    %6 = tpu.assume_multiple %5, 2048 : i32
    %7 = arith.index_cast %6 : i32 to index
    %c0_3 = arith.constant 0 : index
    %8 = vector.load %arg3[%7, %c0_3] : memref<2048x256xf32, #tpu.memory_space<vmem>>, vector<2048x256xf32>
    %c0_4 = arith.constant 0 : index
    %c0_5 = arith.constant 0 : index
    %9 = vector.load %arg5[%c0_4, %c0_5] : memref<2x256xf32, #tpu.memory_space<vmem>>, vector<2x256xf32>
    %cst_6 = arith.constant dense<0.000000e+00> : vector<2x256xf32>
    %10 = tpu.matmul %4, %8, %cst_6 {dimension_numbers = #tpu.dot_dimension_numbers<[1], [0], [0], [1], [0, 0, 1, 1], [], []>} : vector<2x2048xf32>, vector<2048x256xf32>, vector<2x256xf32> -> vector<2x256xf32>
    %11 = arith.addf %9, %10 : vector<2x256xf32>
    %c0_7 = arith.constant 0 : index
    %c0_8 = arith.constant 0 : index
    %12 = vector.load %arg5[%c0_7, %c0_8] : memref<2x256xf32, #tpu.memory_space<vmem>>, vector<2x256xf32>
    tpu.vector_store %arg5[%c0_7, %c0_8], %11 {strides = array<i32>} : memref<2x256xf32, #tpu.memory_space<vmem>>, vector<2x256xf32>,
    %c0_i32_9 = arith.constant 0 : i32
    %13 = arith.cmpi eq, %arg1, %c0_i32_9 : i32
    %14 = arith.extui %13 : i1 to i32
    %c0_i32_10 = arith.constant 0 : i32
    %15 = arith.cmpi ne, %14, %c0_i32_10 : i32
    scf.if %15 {
      %c0_11 = arith.constant 0 : index
      %c0_12 = arith.constant 0 : index
      %16 = vector.load %arg5[%c0_11, %c0_12] : memref<2x256xf32, #tpu.memory_space<vmem>>, vector<2x256xf32>
      %c0_13 = arith.constant 0 : index
      %c0_14 = arith.constant 0 : index
      %17 = vector.load %arg4[%c0_13, %c0_14] : memref<1x256xf32, #tpu.memory_space<vmem>>, vector<1x256xf32>
      %18 = vector.broadcast %17 : vector<1x256xf32> to vector<2x256xf32>
      %19 = arith.addf %16, %18 : vector<2x256xf32>
      %c0_15 = arith.constant 0 : index
      %c0_16 = arith.constant 0 : index
      %20 = vector.load %arg5[%c0_15, %c0_16] : memref<2x256xf32, #tpu.memory_space<vmem>>, vector<2x256xf32>
      tpu.vector_store %arg5[%c0_15, %c0_16], %19 {strides = array<i32>} : memref<2x256xf32, #tpu.memory_space<vmem>>, vector<2x256xf32>,
    } else {
    }
    return
  }
  func.func @transform_0(%arg0: i32, %arg1: i32) -> (i32, i32, i32) {
    %c0_i32 = arith.constant 0 : i32
    %c0_i32_0 = arith.constant 0 : i32
    return %arg0, %c0_i32, %arg1 : i32, i32, i32
  }
  func.func @transform_1(%arg0: i32, %arg1: i32) -> (i32, i32) {
    %c0_i32 = arith.constant 0 : i32
    %c0_i32_0 = arith.constant 0 : i32
    %c0_i32_1 = arith.constant 0 : i32
    return %c0_i32, %c0_i32_0 : i32, i32
  }
  func.func @transform_2(%arg0: i32, %arg1: i32) -> (i32, i32) {
    %c0_i32 = arith.constant 0 : i32
    %c0_i32_0 = arith.constant 0 : i32
    %c0_i32_1 = arith.constant 0 : i32
    return %c0_i32, %c0_i32_0 : i32, i32
  }
  func.func @transform_3(%arg0: i32, %arg1: i32) -> (i32, i32) {
    %c0_i32 = arith.constant 0 : i32
    %c0_i32_0 = arith.constant 0 : i32
    return %arg0, %c0_i32 : i32, i32
  }
}

</mosaic_0001>

<bundles_post_ra>
// kernel: tpu_custom_call.1
= control target key start
LH: loop header
LB: loop body
LE: loop exit
PB: predicated region body
PF: predicated region fallthrough
CT: control target
= control target key end

     0   :  { %8 = vsyncpa [#allocation3], 0  ;;  %s1709_s0 = inlined_call_operand.hbm [shape: f32[2,16,2048], index: 0, kind: input, shape index: {}]   ;;  %s1710_s1 = inlined_call_operand.hbm [shape: f32[2048,256], index: 1, kind: input, shape index: {}]   ;;  %s1711_s2 = inlined_call_operand.hbm [shape: f32[1,256], index: 2, kind: input, shape index: {}]   ;;  %s1712_s3 = inlined_call_operand.hbm [shape: f32[2,256], index: 3, kind: output, shape index: {}]  }
   0x1   :  { %9 = vsyncpa [#allocation6], 0 }
   0x2   :  { %10 = vsyncpa [#allocation4], 0  ;;  %s1651_s12 = smov [#allocation5]  }
   0x3   :  { %s28_s13 = sshll.u32 %s1651_s12, 4  ;;  %s29_s13 = int_to_ptr.vmem [resolvable:$true] %s28_s13 }
   0x4   :  { %s1573_s14 = scalar_lea.vmem %s29_s13, 65536  ;;  %p1578_p1 = scmp.lt.s32.totalorder %s29_s13, %s29_s13 }
   0x5   :  { %p1574_p0 = scmp.ne.s32.totalorder %s29_s13, %s1573_s14  ;;  %p1579_p2 = scmp.lt.s32.totalorder %s1573_s14, %s1573_s14 }
   0x7   :  { %p1580_p3 = por %p1579_p2, %p1578_p1 }
   0x9   :  { %p1581_p4 = pnand %p1580_p3, %p1574_p0 }
   0xb   :  { %1584 = shalt.err (!%p1581_p4)
}
   0xc   :  { %s1652_s15 = smov 256   ;;  %s1653_s16 = smov 16  }
   0xd   :  { %34 = dma.hbm_to_vmem [thread:$0]  %s1710_s1, 65536, %s29_s13, [#allocation6], %s1652_s15, %s1652_s15, %s1653_s16  }
   0xe   :  { %s1654_s19 = smov [#allocation2]  }
   0xf   :  { %s16_s20 = sshll.u32 %s1654_s19, 4  ;;  %s17_s20 = int_to_ptr.vmem [resolvable:$true] %s16_s20 }
  0x10   :  { %s1593_s21 = scalar_lea.vmem %s17_s20, 8192  ;;  %p1598_p6 = scmp.lt.s32.totalorder %s17_s20, %s17_s20 }
  0x11   :  { %p1594_p5 = scmp.ne.s32.totalorder %s17_s20, %s1593_s21  ;;  %p1599_p7 = scmp.lt.s32.totalorder %s1593_s21, %s1593_s21 }
  0x13   :  { %p1600_p8 = por %p1599_p7, %p1598_p6 }
  0x15   :  { %p1601_p9 = pnand %p1600_p8, %p1594_p5 }
  0x17   :  { %1604 = shalt.err (!%p1601_p9)
}
  0x18   :  { %s1655_s22 = smov 2048   ;;  %s1656_s23 = smov 128  }
  0x19   :  { %22 = dma.hbm_to_vmem [thread:$0]  %s1709_s0, 8192, %s17_s20, [#allocation3], %s1655_s22, %s1655_s22, %s1656_s23  }
  0x1a   :  { %s1657_s26 = smov [#allocation7]  }
  0x1b   :  { %s41_s27 = sshll.u32 %s1657_s26, 4  ;;  %s42_s27 = int_to_ptr.vmem [resolvable:$true] %s41_s27 }
  0x1c   :  { %s1613_s1 = scalar_lea.vmem %s42_s27, 32  ;;  %p1618_p11 = scmp.lt.s32.totalorder %s42_s27, %s42_s27 }
  0x1d   :  { %p1614_p10 = scmp.ne.s32.totalorder %s42_s27, %s1613_s1  ;;  %p1619_p12 = scmp.lt.s32.totalorder %s1613_s1, %s1613_s1 }
  0x1f   :  { %p1620_p13 = por %p1619_p12, %p1618_p11 }
  0x21   :  { %p1621_p0 = pnand %p1620_p13, %p1614_p10 }
  0x23   :  { %1624 = shalt.err (!%p1621_p0)
}
  0x24   :  { %44 = dma.hbm_to_vmem [thread:$0]  %s1711_s2, 32, %s42_s27, [#allocation6]  }
  0x25   :  { %1645 = dma.done.wait [#allocation3], 8192  }
  0x26   :  { %1646 = vsyncadd [#allocation3], 4294959104 }
  0x27   :  { %1647 = dma.done.wait [#allocation6], 65568  }
  0x28   :  { %1648 = vsyncadd [#allocation6], 4294901728  ;;  %v384_v0 = vld [vmem:[#allocation5 + $0xf8] sm:$0xff]  ;;  %v383_v2 = vld [vmem:[#allocation5 + $0xf0] sm:$0xff]  ;;  %vm898_vm0 = vcmask 1041409   ;;  %s1660_s0 = smov [#allocation8]  }
  0x29   :  { %v448_v1 = vld [vmem:[#allocation5 + $0x2f8] sm:$0xff]  ;;  %931 = vmatprep.subr.mxu0 %v384_v0  ;;  %v447_v3 = vld [vmem:[#allocation5 + $0x2f0] sm:$0xff]  ;;  %v382_v4 = vld [vmem:[#allocation5 + $0xe8] sm:$0xff]  ;;  %s1543_s2 = sshll.u32 %s1660_s0, 4  ;;  %s1544_s2 = int_to_ptr.vmem [resolvable:$true] %s1543_s2 }
  0x2a   :  { %1002 = vmatprep.subr.mxu1 %v448_v1  ;;  %v446_v5 = vld [vmem:[#allocation5 + $0x2e8] sm:$0xff]  ;;  %932 = vmatpush1.msra.mxu0 %v383_v2  ;;  %v381_v6 = vld [vmem:[#allocation5 + $0xe0] sm:$0xff]  ;;  %v380_v8 = vld [vmem:[#allocation5 + $0xd8] sm:$0xff]  ;;  %s1625_s30 = scalar_lea.vmem %s1544_s2, 64  ;;  %p1630_p2 = scmp.lt.s32.totalorder %s1544_s2, %s1544_s2 }
  0x2b   :  { %1003 = vmatpush1.msra.mxu1 %v447_v3  ;;  %v445_v7 = vld [vmem:[#allocation5 + $0x2e0] sm:$0xff]  ;;  %933 = vmatprep.subr.mxu0 %v382_v4  ;;  %v444_v9 = vld [vmem:[#allocation5 + $0x2d8] sm:$0xff]  ;;  %v379_v10 = vld [vmem:[#allocation5 + $0xd0] sm:$0xff]  ;;  %p1626_p1 = scmp.ne.s32.totalorder %s1544_s2, %s1625_s30  ;;  %p1631_p3 = scmp.lt.s32.totalorder %s1625_s30, %s1625_s30 }
  0x2c   :  { %1004 = vmatprep.subr.mxu1 %v446_v5  ;;  %v443_v11 = vld [vmem:[#allocation5 + $0x2d0] sm:$0xff]  ;;  %934 = vmatpush1.msra.mxu0 %v381_v6  ;;  %v378_v12 = vld [vmem:[#allocation5 + $0xc8] sm:$0xff]  ;;  %v377_v14 = vld [vmem:[#allocation5 + $0xc0] sm:$0xff] }
  0x2d   :  { %1005 = vmatpush1.msra.mxu1 %v445_v7  ;;  %v442_v13 = vld [vmem:[#allocation5 + $0x2c8] sm:$0xff]  ;;  %935 = vmatprep.subr.mxu0 %v380_v8  ;;  %v441_v15 = vld [vmem:[#allocation5 + $0x2c0] sm:$0xff]  ;;  %v376_v16 = vld [vmem:[#allocation5 + $0xb8] sm:$0xff]  ;;  %p1632_p4 = por %p1631_p3, %p1630_p2 }
  0x2e   :  { %1006 = vmatprep.subr.mxu1 %v444_v9  ;;  %936 = vmatpush1.msra.mxu0 %v379_v10  ;;  %v440_v17 = vld [vmem:[#allocation5 + $0x2b8] sm:$0xff]  ;;  %v375_v18 = vld [vmem:[#allocation5 + $0xb0] sm:$0xff]  ;;  %v374_v20 = vld [vmem:[#allocation5 + $0xa8] sm:$0xff] }
  0x2f   :  { %1007 = vmatpush1.msra.mxu1 %v443_v11  ;;  %937 = vmatprep.subr.mxu0 %v378_v12  ;;  %v439_v19 = vld [vmem:[#allocation5 + $0x2b0] sm:$0xff]  ;;  %v438_v21 = vld [vmem:[#allocation5 + $0x2a8] sm:$0xff]  ;;  %v373_v22 = vld [vmem:[#allocation5 + $0xa0] sm:$0xff]  ;;  %p1633_p5 = pnand %p1632_p4, %p1626_p1 }
  0x30   :  { %1008 = vmatprep.subr.mxu1 %v442_v13  ;;  %938 = vmatpush1.msra.mxu0 %v377_v14  ;;  %v437_v23 = vld [vmem:[#allocation5 + $0x2a0] sm:$0xff]  ;;  %v372_v24 = vld [vmem:[#allocation5 + $0x98] sm:$0xff]  ;;  %v371_v26 = vld [vmem:[#allocation5 + $0x90] sm:$0xff] }
  0x31   :  { %1009 = vmatpush1.msra.mxu1 %v441_v15  ;;  %939 = vmatprep.subr.mxu0 %v376_v16  ;;  %v436_v25 = vld [vmem:[#allocation5 + $0x298] sm:$0xff]  ;;  %v435_v27 = vld [vmem:[#allocation5 + $0x290] sm:$0xff]  ;;  %v370_v28 = vld [vmem:[#allocation5 + $0x88] sm:$0xff] }
  0x32   :  { %1010 = vmatprep.subr.mxu1 %v440_v17  ;;  %940 = vmatpush1.msra.mxu0 %v375_v18  ;;  %v434_v29 = vld [vmem:[#allocation5 + $0x288] sm:$0xff]  ;;  %v369_v30 = vld [vmem:[#allocation5 + $0x80] sm:$0xff]  ;;  %v368_v32 = vld [vmem:[#allocation5 + $0x78] sm:$0xff] }
  0x33   :  { %1011 = vmatpush1.msra.mxu1 %v439_v19  ;;  %941 = vmatprep.subr.mxu0 %v374_v20  ;;  %v433_v31 = vld [vmem:[#allocation5 + $0x280] sm:$0xff]  ;;  %v432_v33 = vld [vmem:[#allocation5 + $0x278] sm:$0xff]  ;;  %v367_v34 = vld [vmem:[#allocation5 + $0x70] sm:$0xff] }
  0x34   :  { %1012 = vmatprep.subr.mxu1 %v438_v21  ;;  %942 = vmatpush1.msra.mxu0 %v373_v22  ;;  %v431_v35 = vld [vmem:[#allocation5 + $0x270] sm:$0xff]  ;;  %v366_v36 = vld [vmem:[#allocation5 + $0x68] sm:$0xff]  ;;  %v365_v38 = vld [vmem:[#allocation5 + $0x60] sm:$0xff] }
  0x35   :  { %1013 = vmatpush1.msra.mxu1 %v437_v23  ;;  %943 = vmatprep.subr.mxu0 %v372_v24  ;;  %v430_v37 = vld [vmem:[#allocation5 + $0x268] sm:$0xff]  ;;  %v429_v39 = vld [vmem:[#allocation5 + $0x260] sm:$0xff]  ;;  %v364_v40 = vld [vmem:[#allocation5 + $0x58] sm:$0xff] }
  0x36   :  { %1014 = vmatprep.subr.mxu1 %v436_v25  ;;  %944 = vmatpush1.msra.mxu0 %v371_v26  ;;  %v428_v41 = vld [vmem:[#allocation5 + $0x258] sm:$0xff]  ;;  %v363_v42 = vld [vmem:[#allocation5 + $0x50] sm:$0xff]  ;;  %v362_v44 = vld [vmem:[#allocation5 + $0x48] sm:$0xff] }
  0x37   :  { %1015 = vmatpush1.msra.mxu1 %v435_v27  ;;  %945 = vmatprep.subr.mxu0 %v370_v28  ;;  %v427_v43 = vld [vmem:[#allocation5 + $0x250] sm:$0xff]  ;;  %v426_v45 = vld [vmem:[#allocation5 + $0x248] sm:$0xff]  ;;  %v361_v46 = vld [vmem:[#allocation5 + $0x40] sm:$0xff] }
  0x38   :  { %1016 = vmatprep.subr.mxu1 %v434_v29  ;;  %946 = vmatpush1.msra.mxu0 %v369_v30  ;;  %v425_v47 = vld [vmem:[#allocation5 + $0x240] sm:$0xff]  ;;  %v360_v48 = vld [vmem:[#allocation5 + $0x38] sm:$0xff]  ;;  %v359_v50 = vld [vmem:[#allocation5 + $0x30] sm:$0xff] }
  0x39   :  { %1017 = vmatpush1.msra.mxu1 %v433_v31  ;;  %947 = vmatprep.subr.mxu0 %v368_v32  ;;  %v424_v49 = vld [vmem:[#allocation5 + $0x238] sm:$0xff]  ;;  %v423_v51 = vld [vmem:[#allocation5 + $0x230] sm:$0xff]  ;;  %v358_v52 = vld [vmem:[#allocation5 + $0x28] sm:$0xff] }
  0x3a   :  { %1018 = vmatprep.subr.mxu1 %v432_v33  ;;  %948 = vmatpush1.msra.mxu0 %v367_v34  ;;  %v422_v53 = vld [vmem:[#allocation5 + $0x228] sm:$0xff]  ;;  %v357_v54 = vld [vmem:[#allocation5 + $0x20] sm:$0xff]  ;;  %v356_v56 = vld [vmem:[#allocation5 + $0x18] sm:$0xff] }
  0x3b   :  { %1019 = vmatpush1.msra.mxu1 %v431_v35  ;;  %949 = vmatprep.subr.mxu0 %v366_v36  ;;  %v421_v55 = vld [vmem:[#allocation5 + $0x220] sm:$0xff]  ;;  %v420_v57 = vld [vmem:[#allocation5 + $0x218] sm:$0xff]  ;;  %v355_v58 = vld [vmem:[#allocation5 + $0x10] sm:$0xff] }
  0x3c   :  { %1020 = vmatprep.subr.mxu1 %v430_v37  ;;  %950 = vmatpush1.msra.mxu0 %v365_v38  ;;  %v419_v59 = vld [vmem:[#allocation5 + $0x210] sm:$0xff]  ;;  %v354_v60 = vld [vmem:[#allocation5 + $0x8] sm:$0xff]  ;;  %v353_v62 = vld [vmem:[#allocation5] sm:$0xff] }
  0x3d   :  { %1021 = vmatpush1.msra.mxu1 %v429_v39  ;;  %951 = vmatprep.subr.mxu0 %v364_v40  ;;  %v418_v61 = vld [vmem:[#allocation5 + $0x208] sm:$0xff]  ;;  %v417_v63 = vld [vmem:[#allocation5 + $0x200] sm:$0xff]  ;;  %v416_v0 = vld [vmem:[#allocation5 + $0x1f8] sm:$0xff] }
  0x3e   :  { %1022 = vmatprep.subr.mxu1 %v428_v41  ;;  %952 = vmatpush1.msra.mxu0 %v363_v42  ;;  %v480_v1 = vld [vmem:[#allocation5 + $0x3f8] sm:$0xff]  ;;  %v415_v2 = vld [vmem:[#allocation5 + $0x1f0] sm:$0xff]  ;;  %v414_v4 = vld [vmem:[#allocation5 + $0x1e8] sm:$0xff] }
  0x3f   :  { %1023 = vmatpush1.msra.mxu1 %v427_v43  ;;  %953 = vmatprep.subr.mxu0 %v362_v44  ;;  %v479_v3 = vld [vmem:[#allocation5 + $0x3f0] sm:$0xff]  ;;  %v478_v5 = vld [vmem:[#allocation5 + $0x3e8] sm:$0xff]  ;;  %v413_v6 = vld [vmem:[#allocation5 + $0x1e0] sm:$0xff] }
  0x40   :  { %1024 = vmatprep.subr.mxu1 %v426_v45  ;;  %954 = vmatpush1.msra.mxu0 %v361_v46  ;;  %v477_v7 = vld [vmem:[#allocation5 + $0x3e0] sm:$0xff]  ;;  %v412_v8 = vld [vmem:[#allocation5 + $0x1d8] sm:$0xff]  ;;  %v411_v10 = vld [vmem:[#allocation5 + $0x1d0] sm:$0xff] }
  0x41   :  { %1025 = vmatpush1.msra.mxu1 %v425_v47  ;;  %955 = vmatprep.subr.mxu0 %v360_v48  ;;  %v476_v9 = vld [vmem:[#allocation5 + $0x3d8] sm:$0xff]  ;;  %v475_v11 = vld [vmem:[#allocation5 + $0x3d0] sm:$0xff]  ;;  %v410_v12 = vld [vmem:[#allocation5 + $0x1c8] sm:$0xff] }
  0x42   :  { %1026 = vmatprep.subr.mxu1 %v424_v49  ;;  %956 = vmatpush1.msra.mxu0 %v359_v50  ;;  %v474_v13 = vld [vmem:[#allocation5 + $0x3c8] sm:$0xff]  ;;  %v409_v14 = vld [vmem:[#allocation5 + $0x1c0] sm:$0xff]  ;;  %v408_v16 = vld [vmem:[#allocation5 + $0x1b8] sm:$0xff] }
  0x43   :  { %1027 = vmatpush1.msra.mxu1 %v423_v51  ;;  %957 = vmatprep.subr.mxu0 %v358_v52  ;;  %v473_v15 = vld [vmem:[#allocation5 + $0x3c0] sm:$0xff]  ;;  %v472_v17 = vld [vmem:[#allocation5 + $0x3b8] sm:$0xff]  ;;  %v407_v18 = vld [vmem:[#allocation5 + $0x1b0] sm:$0xff] }
  0x44   :  { %1028 = vmatprep.subr.mxu1 %v422_v53  ;;  %958 = vmatpush1.msra.mxu0 %v357_v54  ;;  %v471_v19 = vld [vmem:[#allocation5 + $0x3b0] sm:$0xff]  ;;  %v406_v20 = vld [vmem:[#allocation5 + $0x1a8] sm:$0xff]  ;;  %v405_v22 = vld [vmem:[#allocation5 + $0x1a0] sm:$0xff] }
  0x45   :  { %1029 = vmatpush1.msra.mxu1 %v421_v55  ;;  %959 = vmatprep.subr.mxu0 %v356_v56  ;;  %v470_v21 = vld [vmem:[#allocation5 + $0x3a8] sm:$0xff]  ;;  %v469_v23 = vld [vmem:[#allocation5 + $0x3a0] sm:$0xff]  ;;  %v404_v24 = vld [vmem:[#allocation5 + $0x198] sm:$0xff] }
  0x46   :  { %1030 = vmatprep.subr.mxu1 %v420_v57  ;;  %960 = vmatpush1.msra.mxu0 %v355_v58  ;;  %v468_v25 = vld [vmem:[#allocation5 + $0x398] sm:$0xff]  ;;  %v403_v26 = vld [vmem:[#allocation5 + $0x190] sm:$0xff]  ;;  %v402_v28 = vld [vmem:[#allocation5 + $0x188] sm:$0xff] }
  0x47   :  { %1031 = vmatpush1.msra.mxu1 %v419_v59  ;;  %961 = vmatprep.subr.mxu0 %v354_v60  ;;  %v467_v27 = vld [vmem:[#allocation5 + $0x390] sm:$0xff]  ;;  %v466_v29 = vld [vmem:[#allocation5 + $0x388] sm:$0xff]  ;;  %v401_v32 = vld [vmem:[#allocation5 + $0x180] sm:$0xff] }
  0x48   :  { %1032 = vmatprep.subr.mxu1 %v418_v61  ;;  %962 = vmatpush1.msra.mxu0 %v353_v62  ;;  %v60_v30 = vld [vmem:[#allocation2 + $0x8] sm:$0xff]  ;;  %v465_v33 = vld [vmem:[#allocation5 + $0x380] sm:$0xff]  ;;  %v400_v37 = vld [vmem:[#allocation5 + $0x178] sm:$0xff] }
  0x49   :  { %1033 = vmatpush1.msra.mxu1 %v417_v63  ;;  %963 = vmatprep.subr.mxu0 %v416_v0  ;;  %v76_v31 = vld [vmem:[#allocation2 + $0x88] sm:$0xff]  ;;  %v464_v38 = vld [vmem:[#allocation5 + $0x378] sm:$0xff]  ;;  %v399_v43 = vld [vmem:[#allocation5 + $0x170] sm:$0xff] }
  0x4a   :  { %1034 = vmatprep.subr.mxu1 %v480_v1  ;;  %964 = vmatpush2.msra.mxu0 %v415_v2  ;;  %v92_v34 = vld [vmem:[#allocation2 + $0x108] sm:$0xff]  ;;  %v130_v36 = vmax.f32 %v60_v30, %v76_v31  ;;  %v62_v40 = vld [vmem:[#allocation2 + $0x18] sm:$0xff]  ;;  %v463_v44 = vld [vmem:[#allocation5 + $0x370] sm:$0xff] }
  0x4b   :  { %1035 = vmatpush2.msra.mxu1 %v479_v3  ;;  %965 = vmatprep.subr.mxu0 %v414_v4  ;;  %v108_v35 = vld [vmem:[#allocation2 + $0x188] sm:$0xff]  ;;  %v78_v41 = vld [vmem:[#allocation2 + $0x98] sm:$0xff]  ;;  %v59_v48 = vld [vmem:[#allocation2] sm:$0xff] }
  0x4c   :  { %1036 = vmatprep.subr.mxu1 %v478_v5  ;;  %966 = vmatpush2.msra.mxu0 %v413_v6  ;;  %v242_v39 = vmax.f32 %v92_v34, %v108_v35  ;;  %v94_v42 = vld [vmem:[#allocation2 + $0x118] sm:$0xff]  ;;  %v131_v45 = vrot.slane %v130_v36, 4  ;;  %v144_v47 = vmax.f32 %v62_v40, %v78_v41  ;;  %v75_v49 = vld [vmem:[#allocation2 + $0x80] sm:$0xff]  ;;  %v61_v55 = vld [vmem:[#allocation2 + $0x10] sm:$0xff] }
  0x4d   :  { %1037 = vmatpush2.msra.mxu1 %v477_v7  ;;  %967 = vmatprep.subr.mxu0 %v412_v8  ;;  %v110_v46 = vld [vmem:[#allocation2 + $0x198] sm:$0xff]  ;;  %v91_v52 = vld [vmem:[#allocation2 + $0x100] sm:$0xff]  ;;  %v123_v54 = vmax.f32 %v59_v48, %v75_v49  ;;  %v77_v59 = vld [vmem:[#allocation2 + $0x90] sm:$0xff] }
  0x4e   :  { %1038 = vmatprep.subr.mxu1 %v476_v9  ;;  %968 = vmatpush2.msra.mxu0 %v411_v10  ;;  %v243_v50 = vrot.slane %v242_v39, 4  ;;  %v256_v51 = vmax.f32 %v94_v42, %v110_v46  ;;  %v107_v53 = vld [vmem:[#allocation2 + $0x180] sm:$0xff]  ;;  %v132_v56 = vmax.f32 %v130_v36, %v131_v45  ;;  %v145_v57 = vrot.slane %v144_v47, 4  ;;  %v93_v60 = vld [vmem:[#allocation2 + $0x110] sm:$0xff]  ;;  %v398_v62 = vld [vmem:[#allocation5 + $0x168] sm:$0xff] }
  0x4f   :  { %1039 = vmatpush2.msra.mxu1 %v475_v11  ;;  %969 = vmatprep.subr.mxu0 %v410_v12  ;;  %v235_v58 = vmax.f32 %v91_v52, %v107_v53  ;;  %v109_v61 = vld [vmem:[#allocation2 + $0x190] sm:$0xff]  ;;  %v462_v63 = vld [vmem:[#allocation5 + $0x368] sm:$0xff]  ;;  %v124_v2 = vrot.slane %v123_v54, 4  ;;  %v137_v3 = vmax.f32 %v61_v55, %v77_v59  ;;  %v397_v4 = vld [vmem:[#allocation5 + $0x160] sm:$0xff] }
  0x50   :  { %1040 = vmatprep.subr.mxu1 %v474_v13  ;;  %970 = vmatpush2.msra.mxu0 %v409_v14  ;;  %v244_v0 = vmax.f32 %v242_v39, %v243_v50  ;;  %v257_v1 = vrot.slane %v256_v51, 4  ;;  %v461_v5 = vld [vmem:[#allocation5 + $0x360] sm:$0xff]  ;;  %v133_v6 = vrot.slane %v132_v56, 2  ;;  %v146_v7 = vmax.f32 %v144_v47, %v145_v57  ;;  %v396_v10 = vld [vmem:[#allocation5 + $0x158] sm:$0xff]  ;;  %v391_v40 = vld [vmem:[#allocation5 + $0x130] sm:$0xff] }
  0x51   :  { %1041 = vmatpush2.msra.mxu1 %v473_v15  ;;  %971 = vmatprep.subr.mxu0 %v408_v16  ;;  %v236_v8 = vrot.slane %v235_v58, 4  ;;  %v249_v9 = vmax.f32 %v93_v60, %v109_v61  ;;  %v460_v11 = vld [vmem:[#allocation5 + $0x358] sm:$0xff]  ;;  %v125_v14 = vmax.f32 %v123_v54, %v124_v2  ;;  %v138_v15 = vrot.slane %v137_v3, 4  ;;  %v395_v16 = vld [vmem:[#allocation5 + $0x150] sm:$0xff]  ;;  %v390_v45 = vld [vmem:[#allocation5 + $0x128] sm:$0xff] }
  0x52   :  { %1042 = vmatprep.subr.mxu1 %v472_v17  ;;  %972 = vmatpush2.msra.mxu0 %v407_v18  ;;  %v245_v12 = vrot.slane %v244_v0, 2  ;;  %v258_v13 = vmax.f32 %v256_v51, %v257_v1  ;;  %v459_v17 = vld [vmem:[#allocation5 + $0x350] sm:$0xff]  ;;  %v134_v18 = vmax.f32 %v132_v56, %v133_v6  ;;  %v392_v34 = vld [vmem:[#allocation5 + $0x138] sm:$0xff]  ;;  %v454_v46 = vld [vmem:[#allocation5 + $0x328] sm:$0xff] }
  0x53   :  { %1043 = vmatpush2.msra.mxu1 %v471_v19  ;;  %973 = vmatprep.subr.mxu0 %v406_v20  ;;  %v147_v19 = vrot.slane %v146_v7, 2  ;;  %v237_v20 = vmax.f32 %v235_v58, %v236_v8  ;;  %v456_v35 = vld [vmem:[#allocation5 + $0x338] sm:$0xff]  ;;  %v455_v41 = vld [vmem:[#allocation5 + $0x330] sm:$0xff]  ;;  %v389_v50 = vld [vmem:[#allocation5 + $0x120] sm:$0xff] }
  0x54   :  { %1044 = vmatprep.subr.mxu1 %v470_v21  ;;  %974 = vmatpush2.msra.mxu0 %v405_v22  ;;  %v250_v21 = vrot.slane %v249_v9, 4  ;;  %v394_v22 = vld [vmem:[#allocation5 + $0x148] sm:$0xff]  ;;  %v135_v30 = vrot.slane %v134_v18, 1  ;;  %v453_v51 = vld [vmem:[#allocation5 + $0x320] sm:$0xff]  ;;  %v388_v56 = vld [vmem:[#allocation5 + $0x118] sm:$0xff] }
  0x55   :  { %1045 = vmatpush2.msra.mxu1 %v469_v23  ;;  %975 = vmatprep.subr.mxu0 %v404_v24  ;;  %v458_v23 = vld [vmem:[#allocation5 + $0x348] sm:$0xff]  ;;  %v246_v24 = vmax.f32 %v244_v0, %v245_v12  ;;  %v148_v31 = vmax.f32 %v146_v7, %v147_v19  ;;  %v452_v57 = vld [vmem:[#allocation5 + $0x318] sm:$0xff]  ;;  %v387_v61 = vld [vmem:[#allocation5 + $0x110] sm:$0xff] }
  0x56   :  { %1046 = vmatprep.subr.mxu1 %v468_v25  ;;  %976 = vmatpush2.msra.mxu0 %v403_v26  ;;  %v259_v25 = vrot.slane %v258_v13, 2  ;;  %v126_v26 = vrot.slane %v125_v14, 2  ;;  %v136_v52 = vmax.f32 %v134_v18, %v135_v30  ;;  %v386_v2 = vld [vmem:[#allocation5 + $0x108] sm:$0xff]  ;;  %v449_v8 = vld [vmem:[#allocation5 + $0x300] sm:$0xff]  ;;  %v512_v12 = vld [vmem:[#allocation5 + $0x4f8] sm:$0xff] }
  0x57   :  { %1047 = vmatpush2.msra.mxu1 %v467_v27  ;;  %977 = vmatprep.subr.mxu0 %v402_v28  ;;  %v139_v27 = vmax.f32 %v137_v3, %v138_v15  ;;  %v393_v28 = vld [vmem:[#allocation5 + $0x140] sm:$0xff]  ;;  %v247_v36 = vrot.slane %v246_v24, 1  ;;  %v149_v42 = vrot.slane %v148_v31, 1  ;;  %v450_v3 = vld [vmem:[#allocation5 + $0x308] sm:$0xff]  ;;  %v575_v15 = vld [vmem:[#allocation5 + $0x6f0] sm:$0xff] }
  0x58   :  { %1048 = vmatprep.subr.mxu1 %v466_v29  ;;  %978 = vmatpush2.msra.mxu0 %v401_v32  ;;  %v457_v29 = vld [vmem:[#allocation5 + $0x340] sm:$0xff]  ;;  %v238_v32 = vrot.slane %v237_v20, 2  ;;  %v503_v30 = vld [vmem:[#allocation5 + $0x4b0] sm:$0xff] }
  0x59   :  { %1049 = vmatpush2.msra.mxu1 %v465_v33  ;;  %979 = vmatprep.subr.mxu0 %v400_v37  ;;  %v251_v33 = vmax.f32 %v249_v9, %v250_v21  ;;  %v260_v37 = vmax.f32 %v258_v13, %v259_v25  ;;  %v140_v39 = vrot.slane %v139_v27, 2  ;;  %v248_v53 = vmax.f32 %v246_v24, %v247_v36  ;;  %v576_v13 = vld [vmem:[#allocation5 + $0x6f8] sm:$0xff]  ;;  %v509_v18 = vld [vmem:[#allocation5 + $0x4e0] sm:$0xff]  ;;  %v506_v24 = vld [vmem:[#allocation5 + $0x4c8] sm:$0xff] }
  0x5a   :  { %1050 = vmatprep.subr.mxu1 %v464_v38  ;;  %980 = vmatpush2.msra.mxu0 %v399_v43  ;;  %v127_v38 = vmax.f32 %v125_v14, %v126_v26  ;;  %v239_v43 = vmax.f32 %v237_v20, %v238_v32  ;;  %v150_v58 = vmax.f32 %v148_v31, %v149_v42  ;;  %v511_v14 = vld [vmem:[#allocation5 + $0x4f0] sm:$0xff]  ;;  %v573_v19 = vld [vmem:[#allocation5 + $0x6e0] sm:$0xff]  ;;  %v508_v20 = vld [vmem:[#allocation5 + $0x4d8] sm:$0xff] }
  0x5b   :  { %1051 = vmatpush2.msra.mxu1 %v463_v44  ;;  %981 = vmatprep.subr.mxu0 %v398_v62  ;;  %v252_v44 = vrot.slane %v251_v33, 2  ;;  %v261_v47 = vrot.slane %v260_v37, 1  ;;  %v141_v49 = vmax.f32 %v139_v27, %v140_v39  ;;  %v451_v62 = vld [vmem:[#allocation5 + $0x310] sm:$0xff]  ;;  %v900_v6 = vsel %vm898_vm0, %v248_v53, %v136_v52  ;;  %v572_v21 = vld [vmem:[#allocation5 + $0x6d8] sm:$0xff]  ;;  %v570_v25 = vld [vmem:[#allocation5 + $0x6c8] sm:$0xff] }
  0x5c   :  { %1052 = vmatprep.subr.mxu1 %v462_v63  ;;  %982 = vmatpush2.msra.mxu0 %v397_v4  ;;  %v128_v48 = vrot.slane %v127_v38, 1  ;;  %v240_v54 = vrot.slane %v239_v43, 1  ;;  %v505_v26 = vld [vmem:[#allocation5 + $0x4c0] sm:$0xff]  ;;  %v567_v31 = vld [vmem:[#allocation5 + $0x6b0] sm:$0xff]  ;;  %v502_v32 = vld [vmem:[#allocation5 + $0x4a8] sm:$0xff] }
  0x5d   :  { %1053 = vmatpush2.msra.mxu1 %v461_v5  ;;  %983 = vmatprep.subr.mxu0 %v396_v10  ;;  %v253_v55 = vmax.f32 %v251_v33, %v252_v44  ;;  %v262_v59 = vmax.f32 %v260_v37, %v261_v47  ;;  %v142_v60 = vrot.slane %v141_v49, 1  ;;  %v385_v5 = vld [vmem:[#allocation5 + $0x100] sm:$0xff]  ;;  %v566_v33 = vld [vmem:[#allocation5 + $0x6a8] sm:$0xff]  ;;  %v500_v36 = vld [vmem:[#allocation5 + $0x498] sm:$0xff] }
  0x5e   :  { %1054 = vmatprep.subr.mxu1 %v460_v11  ;;  %984 = vmatpush2.msra.mxu0 %v395_v16  ;;  %v129_v63 = vmax.f32 %v127_v38, %v128_v48  ;;  %v241_v0 = vmax.f32 %v239_v43, %v240_v54  ;;  %v510_v16 = vld [vmem:[#allocation5 + $0x4e8] sm:$0xff]  ;;  %v569_v27 = vld [vmem:[#allocation5 + $0x6c0] sm:$0xff]  ;;  %v564_v37 = vld [vmem:[#allocation5 + $0x698] sm:$0xff] }
  0x5f   :  { %1055 = vmatpush2.msra.mxu1 %v459_v17  ;;  %985 = vmatprep.subr.mxu0 %v394_v22  ;;  %v254_v1 = vrot.slane %v253_v55, 1  ;;  %v143_v4 = vmax.f32 %v141_v49, %v142_v60  ;;  %v902_v9 = vsel %vm898_vm0, %v262_v59, %v150_v58  ;;  %v574_v17 = vld [vmem:[#allocation5 + $0x6e8] sm:$0xff]  ;;  %v507_v22 = vld [vmem:[#allocation5 + $0x4d0] sm:$0xff]  ;;  %v497_v42 = vld [vmem:[#allocation5 + $0x480] sm:$0xff] }
  0x60   :  { %1056 = vmatprep.subr.mxu1 %v458_v23  ;;  %986 = vmatpush2.msra.mxu0 %v393_v28  ;;  %v899_v10 = vsel %vm898_vm0, %v241_v0, %v129_v63  ;;  %v571_v23 = vld [vmem:[#allocation5 + $0x6d0] sm:$0xff]  ;;  %v504_v28 = vld [vmem:[#allocation5 + $0x4b8] sm:$0xff]  ;;  %v561_v43 = vld [vmem:[#allocation5 + $0x680] sm:$0xff] }
  0x61   :  { %1057 = vmatpush2.msra.mxu1 %v457_v29  ;;  %987 = vmatprep.subr.mxu0 %v392_v34  ;;  %v255_v7 = vmax.f32 %v253_v55, %v254_v1  ;;  %v568_v29 = vld [vmem:[#allocation5 + $0x6b8] sm:$0xff]  ;;  %v501_v34 = vld [vmem:[#allocation5 + $0x4a0] sm:$0xff]  ;;  %v499_v38 = vld [vmem:[#allocation5 + $0x490] sm:$0xff] }
  0x62   :  { %1058 = vmatprep.subr.mxu1 %v456_v35  ;;  %988 = vmatpush2.msra.mxu0 %v391_v40  ;;  %v565_v35 = vld [vmem:[#allocation5 + $0x6a0] sm:$0xff]  ;;  %v563_v39 = vld [vmem:[#allocation5 + $0x690] sm:$0xff]  ;;  %v498_v40 = vld [vmem:[#allocation5 + $0x488] sm:$0xff] }
  0x63   :  { %1059 = vmatpush2.msra.mxu1 %v455_v41  ;;  %989 = vmatprep.subr.mxu0 %v390_v45  ;;  %v901_v11 = vsel %vm898_vm0, %v255_v7, %v143_v4  ;;  %v562_v41 = vld [vmem:[#allocation5 + $0x688] sm:$0xff]  ;;  %v496_v44 = vld [vmem:[#allocation5 + $0x478] sm:$0xff]  ;;  %v559_v47 = vld [vmem:[#allocation5 + $0x670] sm:$0xff] }
  0x64   :  { %1060 = vmatprep.subr.mxu1 %v454_v46  ;;  %990 = vmatpush2.msra.mxu0 %v389_v50  ;;  %v560_v45 = vld [vmem:[#allocation5 + $0x678] sm:$0xff]  ;;  %v495_v46 = vld [vmem:[#allocation5 + $0x470] sm:$0xff]  ;;  %v494_v48 = vld [vmem:[#allocation5 + $0x468] sm:$0xff] }
  0x65   :  { %1061 = vmatpush2.msra.mxu1 %v453_v51  ;;  %991 = vmatprep.subr.mxu0 %v388_v56  ;;  %v558_v49 = vld [vmem:[#allocation5 + $0x668] sm:$0xff]  ;;  %v493_v50 = vld [vmem:[#allocation5 + $0x460] sm:$0xff]  ;;  %v492_v52 = vld [vmem:[#allocation5 + $0x458] sm:$0xff] }
  0x66   :  { %1062 = vmatprep.subr.mxu1 %v452_v57  ;;  %992 = vmatpush2.msra.mxu0 %v387_v61  ;;  %v557_v51 = vld [vmem:[#allocation5 + $0x660] sm:$0xff]  ;;  %v556_v53 = vld [vmem:[#allocation5 + $0x658] sm:$0xff]  ;;  %v491_v54 = vld [vmem:[#allocation5 + $0x450] sm:$0xff] }
  0x67   :  { %1063 = vmatpush2.msra.mxu1 %v451_v62  ;;  %993 = vmatprep.subr.mxu0 %v386_v2  ;;  %v555_v55 = vld [vmem:[#allocation5 + $0x650] sm:$0xff]  ;;  %v490_v56 = vld [vmem:[#allocation5 + $0x448] sm:$0xff]  ;;  %v489_v58 = vld [vmem:[#allocation5 + $0x440] sm:$0xff] }
  0x68   :  { %1064 = vmatprep.subr.mxu1 %v450_v3  ;;  %994 = vmatpush2.msra.mxu0 %v385_v5  ;;  %v554_v57 = vld [vmem:[#allocation5 + $0x648] sm:$0xff]  ;;  %v553_v59 = vld [vmem:[#allocation5 + $0x640] sm:$0xff]  ;;  %v488_v60 = vld [vmem:[#allocation5 + $0x438] sm:$0xff] }
  0x69   :  { %995 = vmatprep.mubr.f32.mxu0 %v900_v6  ;;  %1065 = vmatpush2.msra.mxu1 %v449_v8  ;;  %v552_v61 = vld [vmem:[#allocation5 + $0x638] sm:$0xff]  ;;  %v487_v62 = vld [vmem:[#allocation5 + $0x430] sm:$0xff]  ;;  %v486_v0 = vld [vmem:[#allocation5 + $0x428] sm:$0xff] }
  0x6a   :  { %1066 = vmatprep.mubr.f32.mxu1 %v902_v9  ;;  %996 = vmatmul.mubr.f32.vlgmr.msra.gmra.mxu0 %v899_v10  ;;  %v551_v63 = vld [vmem:[#allocation5 + $0x630] sm:$0xff]  ;;  %v550_v1 = vld [vmem:[#allocation5 + $0x628] sm:$0xff]  ;;  %v485_v2 = vld [vmem:[#allocation5 + $0x420] sm:$0xff] }
  0x6b   :  { %1067 = vmatmul.mubr.f32.vlgmr.msra.gmra.mxu1 %v901_v11  ;;  %1073 = vmatprep.subr.mxu0 %v512_v12  ;;  %v549_v3 = vld [vmem:[#allocation5 + $0x620] sm:$0xff]  ;;  %v484_v4 = vld [vmem:[#allocation5 + $0x418] sm:$0xff]  ;;  %v483_v6 = vld [vmem:[#allocation5 + $0x410] sm:$0xff] }
  0x6c   :  { %1144 = vmatprep.subr.mxu1 %v576_v13  ;;  %1074 = vmatpush1.msra.mxu0 %v511_v14  ;;  %v548_v5 = vld [vmem:[#allocation5 + $0x618] sm:$0xff]  ;;  %v547_v7 = vld [vmem:[#allocation5 + $0x610] sm:$0xff]  ;;  %v482_v8 = vld [vmem:[#allocation5 + $0x408] sm:$0xff] }
  0x6d   :  { %1145 = vmatpush1.msra.mxu1 %v575_v15  ;;  %1075 = vmatprep.subr.mxu0 %v510_v16  ;;  %v546_v9 = vld [vmem:[#allocation5 + $0x608] sm:$0xff]  ;;  %v481_v10 = vld [vmem:[#allocation5 + $0x400] sm:$0xff]  ;;  %v544_v12 = vld [vmem:[#allocation5 + $0x5f8] sm:$0xff] }
  0x6e   :  { %1146 = vmatprep.subr.mxu1 %v574_v17  ;;  %1076 = vmatpush1.msra.mxu0 %v509_v18  ;;  %v545_v11 = vld [vmem:[#allocation5 + $0x600] sm:$0xff]  ;;  %v608_v13 = vld [vmem:[#allocation5 + $0x7f8] sm:$0xff]  ;;  %v64_v14 = vld [vmem:[#allocation2 + $0x28] sm:$0xff] }
  0x6f   :  { %1147 = vmatpush1.msra.mxu1 %v573_v19  ;;  %1077 = vmatprep.subr.mxu0 %v508_v20  ;;  %v543_v15 = vld [vmem:[#allocation5 + $0x5f0] sm:$0xff]  ;;  %v80_v17 = vld [vmem:[#allocation2 + $0xa8] sm:$0xff] }
  0x70   :  { %1148 = vmatprep.subr.mxu1 %v572_v21  ;;  %1078 = vmatpush1.msra.mxu0 %v507_v22  ;;  %v607_v16 = vld [vmem:[#allocation5 + $0x7f0] sm:$0xff]  ;;  %v96_v18 = vld [vmem:[#allocation2 + $0x128] sm:$0xff]  ;;  %v63_v22 = vld [vmem:[#allocation2 + $0x20] sm:$0xff] }
  0x71   :  { %1149 = vmatpush1.msra.mxu1 %v571_v23  ;;  %1079 = vmatprep.subr.mxu0 %v506_v24  ;;  %v112_v19 = vld [vmem:[#allocation2 + $0x1a8] sm:$0xff]  ;;  %v79_v23 = vld [vmem:[#allocation2 + $0xa0] sm:$0xff] }
  0x72   :  { %1150 = vmatprep.subr.mxu1 %v570_v25  ;;  %1080 = vmatpush1.msra.mxu0 %v505_v26  ;;  %v542_v20 = vld [vmem:[#allocation5 + $0x5e8] sm:$0xff]  ;;  %v95_v24 = vld [vmem:[#allocation2 + $0x120] sm:$0xff] }
  0x73   :  { %1151 = vmatpush1.msra.mxu1 %v569_v27  ;;  %1081 = vmatprep.subr.mxu0 %v504_v28  ;;  %v606_v21 = vld [vmem:[#allocation5 + $0x7e8] sm:$0xff]  ;;  %v541_v25 = vld [vmem:[#allocation5 + $0x5e0] sm:$0xff]  ;;  %v66_v28 = vld [vmem:[#allocation2 + $0x38] sm:$0xff] }
  0x74   :  { %1152 = vmatprep.subr.mxu1 %v568_v29  ;;  %1082 = vmatpush1.msra.mxu0 %v503_v30  ;;  %v605_v26 = vld [vmem:[#allocation5 + $0x7e0] sm:$0xff]  ;;  %v82_v29 = vld [vmem:[#allocation2 + $0xb8] sm:$0xff] }
  0x75   :  { %1153 = vmatpush1.msra.mxu1 %v567_v31  ;;  %1083 = vmatprep.subr.mxu0 %v502_v32  ;;  %v111_v27 = vld [vmem:[#allocation2 + $0x1a0] sm:$0xff]  ;;  %v98_v30 = vld [vmem:[#allocation2 + $0x138] sm:$0xff]  ;;  %v65_v32 = vld [vmem:[#allocation2 + $0x30] sm:$0xff] }
  0x76   :  { %1154 = vmatprep.subr.mxu1 %v566_v33  ;;  %1084 = vmatpush1.msra.mxu0 %v501_v34  ;;  %v114_v31 = vld [vmem:[#allocation2 + $0x1b8] sm:$0xff]  ;;  %v158_v33 = vmax.f32 %v64_v14, %v80_v17  ;;  %v270_v34 = vmax.f32 %v96_v18, %v112_v19  ;;  %v530_v14 = vld [vmem:[#allocation5 + $0x588] sm:$0xff]  ;;  %v529_v18 = vld [vmem:[#allocation5 + $0x580] sm:$0xff] }
  0x77   :  { %1155 = vmatpush1.msra.mxu1 %v565_v35  ;;  %1085 = vmatprep.subr.mxu0 %v500_v36  ;;  %v81_v35 = vld [vmem:[#allocation2 + $0xb0] sm:$0xff]  ;;  %v593_v19 = vld [vmem:[#allocation5 + $0x780] sm:$0xff] }
  0x78   :  { %1156 = vmatprep.subr.mxu1 %v564_v37  ;;  %1086 = vmatpush1.msra.mxu0 %v499_v38  ;;  %v97_v36 = vld [vmem:[#allocation2 + $0x130] sm:$0xff]  ;;  %v540_v38 = vld [vmem:[#allocation5 + $0x5d8] sm:$0xff] }
  0x79   :  { %1157 = vmatpush1.msra.mxu1 %v563_v39  ;;  %1087 = vmatprep.subr.mxu0 %v498_v40  ;;  %v113_v37 = vld [vmem:[#allocation2 + $0x1b0] sm:$0xff]  ;;  %v604_v39 = vld [vmem:[#allocation5 + $0x7d8] sm:$0xff]  ;;  %v151_v40 = vmax.f32 %v63_v22, %v79_v23 }
  0x7a   :  { %1158 = vmatprep.subr.mxu1 %v562_v41  ;;  %1088 = vmatpush1.msra.mxu0 %v497_v42  ;;  %v263_v41 = vmax.f32 %v95_v24, %v111_v27  ;;  %v539_v42 = vld [vmem:[#allocation5 + $0x5d0] sm:$0xff]  ;;  %v528_v22 = vld [vmem:[#allocation5 + $0x578] sm:$0xff] }
  0x7b   :  { %1159 = vmatpush1.msra.mxu1 %v561_v43  ;;  %1089 = vmatprep.subr.mxu0 %v496_v44  ;;  %v603_v43 = vld [vmem:[#allocation5 + $0x7d0] sm:$0xff]  ;;  %v172_v44 = vmax.f32 %v66_v28, %v82_v29  ;;  %v592_v23 = vld [vmem:[#allocation5 + $0x778] sm:$0xff] }
  0x7c   :  { %1160 = vmatprep.subr.mxu1 %v560_v45  ;;  %1090 = vmatpush1.msra.mxu0 %v495_v46  ;;  %v284_v45 = vmax.f32 %v98_v30, %v114_v31  ;;  %v538_v46 = vld [vmem:[#allocation5 + $0x5c8] sm:$0xff]  ;;  %v591_v27 = vld [vmem:[#allocation5 + $0x770] sm:$0xff] }
  0x7d   :  { %1161 = vmatpush1.msra.mxu1 %v559_v47  ;;  %1091 = vmatprep.subr.mxu0 %v494_v48  ;;  %v602_v47 = vld [vmem:[#allocation5 + $0x7c8] sm:$0xff]  ;;  %v165_v48 = vmax.f32 %v65_v32, %v81_v35  ;;  %v589_v35 = vld [vmem:[#allocation5 + $0x760] sm:$0xff] }
  0x7e   :  { %1162 = vmatprep.subr.mxu1 %v558_v49  ;;  %1092 = vmatpush1.msra.mxu0 %v493_v50  ;;  %v277_v49 = vmax.f32 %v97_v36, %v113_v37  ;;  %v537_v50 = vld [vmem:[#allocation5 + $0x5c0] sm:$0xff]  ;;  %v526_v30 = vld [vmem:[#allocation5 + $0x568] sm:$0xff] }
  0x7f   :  { %1163 = vmatpush1.msra.mxu1 %v557_v51  ;;  %1093 = vmatprep.subr.mxu0 %v492_v52  ;;  %v601_v51 = vld [vmem:[#allocation5 + $0x7c0] sm:$0xff]  ;;  %v159_v52 = vrot.slane %v158_v33, 4  ;;  %v590_v31 = vld [vmem:[#allocation5 + $0x768] sm:$0xff] }
  0x80   :  { %1164 = vmatprep.subr.mxu1 %v556_v53  ;;  %1094 = vmatpush1.msra.mxu0 %v491_v54  ;;  %v271_v53 = vrot.slane %v270_v34, 4  ;;  %v536_v54 = vld [vmem:[#allocation5 + $0x5b8] sm:$0xff] }
  0x81   :  { %1165 = vmatpush1.msra.mxu1 %v555_v55  ;;  %1095 = vmatprep.subr.mxu0 %v490_v56  ;;  %v600_v55 = vld [vmem:[#allocation5 + $0x7b8] sm:$0xff]  ;;  %v152_v56 = vrot.slane %v151_v40, 4 }
  0x82   :  { %1166 = vmatprep.subr.mxu1 %v554_v57  ;;  %1096 = vmatpush1.msra.mxu0 %v489_v58  ;;  %v264_v57 = vrot.slane %v263_v41, 4  ;;  %v535_v58 = vld [vmem:[#allocation5 + $0x5b0] sm:$0xff] }
  0x83   :  { %1167 = vmatpush1.msra.mxu1 %v553_v59  ;;  %1097 = vmatprep.subr.mxu0 %v488_v60  ;;  %v599_v59 = vld [vmem:[#allocation5 + $0x7b0] sm:$0xff]  ;;  %v173_v60 = vrot.slane %v172_v44, 4 }
  0x84   :  { %1168 = vmatprep.subr.mxu1 %v552_v61  ;;  %1098 = vmatpush1.msra.mxu0 %v487_v62  ;;  %v285_v61 = vrot.slane %v284_v45, 4  ;;  %v534_v62 = vld [vmem:[#allocation5 + $0x5a8] sm:$0xff] }
  0x85   :  { %1169 = vmatpush1.msra.mxu1 %v551_v63  ;;  %1099 = vmatprep.subr.mxu0 %v486_v0  ;;  %v598_v63 = vld [vmem:[#allocation5 + $0x7a8] sm:$0xff]  ;;  %v166_v0 = vrot.slane %v165_v48, 4 }
  0x86   :  { %1170 = vmatprep.subr.mxu1 %v550_v1  ;;  %1100 = vmatpush1.msra.mxu0 %v485_v2  ;;  %v278_v1 = vrot.slane %v277_v49, 4  ;;  %v533_v2 = vld [vmem:[#allocation5 + $0x5a0] sm:$0xff] }
  0x87   :  { %1171 = vmatpush1.msra.mxu1 %v549_v3  ;;  %1101 = vmatprep.subr.mxu0 %v484_v4  ;;  %v597_v3 = vld [vmem:[#allocation5 + $0x7a0] sm:$0xff]  ;;  %v160_v4 = vmax.f32 %v158_v33, %v159_v52 }
  0x88   :  { %1172 = vmatprep.subr.mxu1 %v548_v5  ;;  %1102 = vmatpush1.msra.mxu0 %v483_v6  ;;  %v272_v5 = vmax.f32 %v270_v34, %v271_v53  ;;  %v532_v6 = vld [vmem:[#allocation5 + $0x598] sm:$0xff]  ;;  %v279_v17 = vmax.f32 %v277_v49, %v278_v1  ;;  %v525_v34 = vld [vmem:[#allocation5 + $0x560] sm:$0xff] }
  0x89   :  { %1173 = vmatpush1.msra.mxu1 %v547_v7  ;;  %1103 = vmatprep.subr.mxu0 %v482_v8  ;;  %v596_v7 = vld [vmem:[#allocation5 + $0x798] sm:$0xff]  ;;  %v153_v8 = vmax.f32 %v151_v40, %v152_v56 }
  0x8a   :  { %1174 = vmatprep.subr.mxu1 %v546_v9  ;;  %1104 = vmatpush1.msra.mxu0 %v481_v10  ;;  %v265_v9 = vmax.f32 %v263_v41, %v264_v57  ;;  %v531_v10 = vld [vmem:[#allocation5 + $0x590] sm:$0xff]  ;;  %v280_v33 = vrot.slane %v279_v17, 2 }
  0x8b   :  { %1175 = vmatpush1.msra.mxu1 %v545_v11  ;;  %1105 = vmatprep.subr.mxu0 %v544_v12  ;;  %v595_v11 = vld [vmem:[#allocation5 + $0x790] sm:$0xff]  ;;  %v174_v12 = vmax.f32 %v172_v44, %v173_v60  ;;  %v154_v24 = vrot.slane %v153_v8, 2 }
  0x8c   :  { %1176 = vmatprep.subr.mxu1 %v608_v13  ;;  %1106 = vmatpush2.msra.mxu0 %v543_v15  ;;  %v286_v13 = vmax.f32 %v284_v45, %v285_v61  ;;  %v594_v15 = vld [vmem:[#allocation5 + $0x788] sm:$0xff]  ;;  %v281_v49 = vmax.f32 %v279_v17, %v280_v33  ;;  %v700_v33 = vld [vmem:[#allocation5 + $0xad8] sm:$0xff] }
  0x8d   :  { %1177 = vmatpush2.msra.mxu1 %v607_v16  ;;  %1107 = vmatprep.subr.mxu0 %v542_v20  ;;  %v167_v16 = vmax.f32 %v165_v48, %v166_v0  ;;  %v161_v20 = vrot.slane %v160_v4, 2  ;;  %v175_v28 = vrot.slane %v174_v12, 2  ;;  %v155_v40 = vmax.f32 %v153_v8, %v154_v24  ;;  %v704_v24 = vld [vmem:[#allocation5 + $0xaf8] sm:$0xff] }
  0x8e   :  { %1178 = vmatprep.subr.mxu1 %v606_v21  ;;  %1108 = vmatpush2.msra.mxu0 %v541_v25  ;;  %v273_v21 = vrot.slane %v272_v5, 2  ;;  %v266_v25 = vrot.slane %v265_v9, 2  ;;  %v287_v29 = vrot.slane %v286_v13, 2  ;;  %v282_v1 = vrot.slane %v281_v49, 1 }
  0x8f   :  { %1179 = vmatpush2.msra.mxu1 %v605_v26  ;;  %1109 = vmatprep.subr.mxu0 %v540_v38  ;;  %v527_v26 = vld [vmem:[#allocation5 + $0x570] sm:$0xff]  ;;  %v168_v32 = vrot.slane %v167_v16, 2  ;;  %v162_v36 = vmax.f32 %v160_v4, %v161_v20  ;;  %v524_v38 = vld [vmem:[#allocation5 + $0x558] sm:$0xff]  ;;  %v176_v44 = vmax.f32 %v174_v12, %v175_v28  ;;  %v156_v56 = vrot.slane %v155_v40, 1  ;;  %v577_v20 = vld [vmem:[#allocation5 + $0x700] sm:$0xff] }
  0x90   :  { %1180 = vmatprep.subr.mxu1 %v604_v39  ;;  %1110 = vmatpush2.msra.mxu0 %v539_v42  ;;  %v274_v37 = vmax.f32 %v272_v5, %v273_v21  ;;  %v588_v39 = vld [vmem:[#allocation5 + $0x758] sm:$0xff]  ;;  %v267_v41 = vmax.f32 %v265_v9, %v266_v25  ;;  %v523_v42 = vld [vmem:[#allocation5 + $0x550] sm:$0xff]  ;;  %v288_v45 = vmax.f32 %v286_v13, %v287_v29  ;;  %v638_v28 = vld [vmem:[#allocation5 + $0x8e8] sm:$0xff] }
  0x91   :  { %1181 = vmatpush2.msra.mxu1 %v603_v43  ;;  %1111 = vmatprep.subr.mxu0 %v538_v46  ;;  %v587_v43 = vld [vmem:[#allocation5 + $0x750] sm:$0xff]  ;;  %v522_v46 = vld [vmem:[#allocation5 + $0x548] sm:$0xff]  ;;  %v169_v48 = vmax.f32 %v167_v16, %v168_v32  ;;  %v163_v52 = vrot.slane %v162_v36, 1  ;;  %v177_v60 = vrot.slane %v176_v44, 1  ;;  %v157_v8 = vmax.f32 %v155_v40, %v156_v56  ;;  %v636_v32 = vld [vmem:[#allocation5 + $0x8d8] sm:$0xff] }
  0x92   :  { %1182 = vmatprep.subr.mxu1 %v602_v47  ;;  %1112 = vmatpush2.msra.mxu0 %v537_v50  ;;  %v586_v47 = vld [vmem:[#allocation5 + $0x748] sm:$0xff]  ;;  %v521_v50 = vld [vmem:[#allocation5 + $0x540] sm:$0xff]  ;;  %v275_v53 = vrot.slane %v274_v37, 1  ;;  %v268_v57 = vrot.slane %v267_v41, 1  ;;  %v289_v61 = vrot.slane %v288_v45, 1  ;;  %v283_v17 = vmax.f32 %v281_v49, %v282_v1  ;;  %v632_v40 = vld [vmem:[#allocation5 + $0x8b8] sm:$0xff] }
  0x93   :  { %1183 = vmatpush2.msra.mxu1 %v601_v51  ;;  %1113 = vmatprep.subr.mxu0 %v536_v54  ;;  %v585_v51 = vld [vmem:[#allocation5 + $0x740] sm:$0xff]  ;;  %v520_v54 = vld [vmem:[#allocation5 + $0x538] sm:$0xff]  ;;  %v170_v0 = vrot.slane %v169_v48, 1  ;;  %v164_v4 = vmax.f32 %v162_v36, %v163_v52  ;;  %v178_v12 = vmax.f32 %v176_v44, %v177_v60  ;;  %v702_v29 = vld [vmem:[#allocation5 + $0xae8] sm:$0xff] }
  0x94   :  { %1184 = vmatprep.subr.mxu1 %v600_v55  ;;  %1114 = vmatpush2.msra.mxu0 %v535_v58  ;;  %v584_v55 = vld [vmem:[#allocation5 + $0x738] sm:$0xff]  ;;  %v519_v58 = vld [vmem:[#allocation5 + $0x530] sm:$0xff]  ;;  %v276_v5 = vmax.f32 %v274_v37, %v275_v53  ;;  %v269_v9 = vmax.f32 %v267_v41, %v268_v57  ;;  %v290_v13 = vmax.f32 %v288_v45, %v289_v61  ;;  %v634_v36 = vld [vmem:[#allocation5 + $0x8c8] sm:$0xff] }
  0x95   :  { %1185 = vmatpush2.msra.mxu1 %v599_v59  ;;  %1115 = vmatprep.subr.mxu0 %v534_v62  ;;  %v583_v59 = vld [vmem:[#allocation5 + $0x730] sm:$0xff]  ;;  %v518_v62 = vld [vmem:[#allocation5 + $0x528] sm:$0xff]  ;;  %v171_v16 = vmax.f32 %v169_v48, %v170_v0  ;;  %v696_v41 = vld [vmem:[#allocation5 + $0xab8] sm:$0xff] }
  0x96   :  { %1186 = vmatprep.subr.mxu1 %v598_v63  ;;  %1116 = vmatpush2.msra.mxu0 %v533_v2  ;;  %v582_v63 = vld [vmem:[#allocation5 + $0x728] sm:$0xff]  ;;  %v517_v2 = vld [vmem:[#allocation5 + $0x520] sm:$0xff]  ;;  %v903_v21 = vsel %vm898_vm0, %v269_v9, %v157_v8  ;;  %v628_v48 = vld [vmem:[#allocation5 + $0x898] sm:$0xff] }
  0x97   :  { %1187 = vmatpush2.msra.mxu1 %v597_v3  ;;  %1117 = vmatprep.subr.mxu0 %v532_v6  ;;  %v581_v3 = vld [vmem:[#allocation5 + $0x720] sm:$0xff]  ;;  %v516_v6 = vld [vmem:[#allocation5 + $0x518] sm:$0xff]  ;;  %v905_v25 = vsel %vm898_vm0, %v283_v17, %v171_v16  ;;  %v698_v37 = vld [vmem:[#allocation5 + $0xac8] sm:$0xff] }
  0x98   :  { %1188 = vmatprep.subr.mxu1 %v596_v7  ;;  %1118 = vmatpush2.msra.mxu0 %v531_v10  ;;  %v580_v7 = vld [vmem:[#allocation5 + $0x718] sm:$0xff]  ;;  %v515_v10 = vld [vmem:[#allocation5 + $0x510] sm:$0xff]  ;;  %v630_v44 = vld [vmem:[#allocation5 + $0x8a8] sm:$0xff] }
  0x99   :  { %1189 = vmatpush2.msra.mxu1 %v595_v11  ;;  %1119 = vmatprep.subr.mxu0 %v530_v14  ;;  %v579_v11 = vld [vmem:[#allocation5 + $0x710] sm:$0xff]  ;;  %v514_v14 = vld [vmem:[#allocation5 + $0x508] sm:$0xff]  ;;  %v692_v49 = vld [vmem:[#allocation5 + $0xa98] sm:$0xff] }
  0x9a   :  { %1190 = vmatprep.subr.mxu1 %v594_v15  ;;  %1120 = vmatpush2.msra.mxu0 %v529_v18  ;;  %v578_v15 = vld [vmem:[#allocation5 + $0x708] sm:$0xff]  ;;  %v513_v18 = vld [vmem:[#allocation5 + $0x500] sm:$0xff]  ;;  %v624_v56 = vld [vmem:[#allocation5 + $0x878] sm:$0xff] }
  0x9b   :  { %1191 = vmatpush2.msra.mxu1 %v593_v19  ;;  %1121 = vmatprep.subr.mxu0 %v528_v22  ;;  %v904_v19 = vsel %vm898_vm0, %v276_v5, %v164_v4  ;;  %v906_v22 = vsel %vm898_vm0, %v290_v13, %v178_v12  ;;  %v694_v45 = vld [vmem:[#allocation5 + $0xaa8] sm:$0xff]  ;;  %v688_v57 = vld [vmem:[#allocation5 + $0xa78] sm:$0xff] }
  0x9c   :  { %1192 = vmatprep.subr.mxu1 %v592_v23  ;;  %1122 = vmatpush2.msra.mxu0 %v527_v26  ;;  %v640_v23 = vld [vmem:[#allocation5 + $0x8f8] sm:$0xff]  ;;  %v639_v26 = vld [vmem:[#allocation5 + $0x8f0] sm:$0xff]  ;;  %v626_v52 = vld [vmem:[#allocation5 + $0x888] sm:$0xff] }
  0x9d   :  { %1193 = vmatpush2.msra.mxu1 %v591_v27  ;;  %1123 = vmatprep.subr.mxu0 %v526_v30  ;;  %v703_v27 = vld [vmem:[#allocation5 + $0xaf0] sm:$0xff]  ;;  %v637_v30 = vld [vmem:[#allocation5 + $0x8e0] sm:$0xff]  ;;  %v690_v53 = vld [vmem:[#allocation5 + $0xa88] sm:$0xff] }
  0x9e   :  { %1194 = vmatprep.subr.mxu1 %v590_v31  ;;  %1124 = vmatpush2.msra.mxu0 %v525_v34  ;;  %v701_v31 = vld [vmem:[#allocation5 + $0xae0] sm:$0xff]  ;;  %v635_v34 = vld [vmem:[#allocation5 + $0x8d0] sm:$0xff]  ;;  %v622_v60 = vld [vmem:[#allocation5 + $0x868] sm:$0xff] }
  0x9f   :  { %1195 = vmatpush2.msra.mxu1 %v589_v35  ;;  %1125 = vmatprep.subr.mxu0 %v524_v38  ;;  %v699_v35 = vld [vmem:[#allocation5 + $0xad0] sm:$0xff]  ;;  %v633_v38 = vld [vmem:[#allocation5 + $0x8c0] sm:$0xff]  ;;  %v686_v61 = vld [vmem:[#allocation5 + $0xa68] sm:$0xff] }
  0xa0   :  { %1196 = vmatprep.subr.mxu1 %v588_v39  ;;  %1126 = vmatpush2.msra.mxu0 %v523_v42  ;;  %v697_v39 = vld [vmem:[#allocation5 + $0xac0] sm:$0xff]  ;;  %v631_v42 = vld [vmem:[#allocation5 + $0x8b0] sm:$0xff]  ;;  %v620_v0 = vld [vmem:[#allocation5 + $0x858] sm:$0xff] }
  0xa1   :  { %1197 = vmatpush2.msra.mxu1 %v587_v43  ;;  %1127 = vmatprep.subr.mxu0 %v522_v46  ;;  %v695_v43 = vld [vmem:[#allocation5 + $0xab0] sm:$0xff]  ;;  %v629_v46 = vld [vmem:[#allocation5 + $0x8a0] sm:$0xff]  ;;  %v684_v1 = vld [vmem:[#allocation5 + $0xa58] sm:$0xff] }
  0xa2   :  { %1198 = vmatprep.subr.mxu1 %v586_v47  ;;  %1128 = vmatpush2.msra.mxu0 %v521_v50  ;;  %v693_v47 = vld [vmem:[#allocation5 + $0xaa0] sm:$0xff]  ;;  %v627_v50 = vld [vmem:[#allocation5 + $0x890] sm:$0xff]  ;;  %v618_v4 = vld [vmem:[#allocation5 + $0x848] sm:$0xff] }
  0xa3   :  { %1199 = vmatpush2.msra.mxu1 %v585_v51  ;;  %1129 = vmatprep.subr.mxu0 %v520_v54  ;;  %v691_v51 = vld [vmem:[#allocation5 + $0xa90] sm:$0xff]  ;;  %v625_v54 = vld [vmem:[#allocation5 + $0x880] sm:$0xff]  ;;  %v682_v5 = vld [vmem:[#allocation5 + $0xa48] sm:$0xff] }
  0xa4   :  { %1200 = vmatprep.subr.mxu1 %v584_v55  ;;  %1130 = vmatpush2.msra.mxu0 %v519_v58  ;;  %v689_v55 = vld [vmem:[#allocation5 + $0xa80] sm:$0xff]  ;;  %v623_v58 = vld [vmem:[#allocation5 + $0x870] sm:$0xff]  ;;  %v616_v8 = vld [vmem:[#allocation5 + $0x838] sm:$0xff] }
  0xa5   :  { %1201 = vmatpush2.msra.mxu1 %v583_v59  ;;  %1131 = vmatprep.subr.mxu0 %v518_v62  ;;  %v687_v59 = vld [vmem:[#allocation5 + $0xa70] sm:$0xff]  ;;  %v621_v62 = vld [vmem:[#allocation5 + $0x860] sm:$0xff]  ;;  %v680_v9 = vld [vmem:[#allocation5 + $0xa38] sm:$0xff] }
  0xa6   :  { %1202 = vmatprep.subr.mxu1 %v582_v63  ;;  %1132 = vmatpush2.msra.mxu0 %v517_v2  ;;  %v685_v63 = vld [vmem:[#allocation5 + $0xa60] sm:$0xff]  ;;  %v619_v2 = vld [vmem:[#allocation5 + $0x850] sm:$0xff]  ;;  %v614_v12 = vld [vmem:[#allocation5 + $0x828] sm:$0xff] }
  0xa7   :  { %1203 = vmatpush2.msra.mxu1 %v581_v3  ;;  %1133 = vmatprep.subr.mxu0 %v516_v6  ;;  %v683_v3 = vld [vmem:[#allocation5 + $0xa50] sm:$0xff]  ;;  %v617_v6 = vld [vmem:[#allocation5 + $0x840] sm:$0xff]  ;;  %v678_v13 = vld [vmem:[#allocation5 + $0xa28] sm:$0xff] }
  0xa8   :  { %1204 = vmatprep.subr.mxu1 %v580_v7  ;;  %1134 = vmatpush2.msra.mxu0 %v515_v10  ;;  %v681_v7 = vld [vmem:[#allocation5 + $0xa40] sm:$0xff]  ;;  %v615_v10 = vld [vmem:[#allocation5 + $0x830] sm:$0xff]  ;;  %v612_v16 = vld [vmem:[#allocation5 + $0x818] sm:$0xff] }
  0xa9   :  { %1205 = vmatpush2.msra.mxu1 %v579_v11  ;;  %1135 = vmatprep.subr.mxu0 %v514_v14  ;;  %v679_v11 = vld [vmem:[#allocation5 + $0xa30] sm:$0xff]  ;;  %v613_v14 = vld [vmem:[#allocation5 + $0x820] sm:$0xff]  ;;  %v676_v17 = vld [vmem:[#allocation5 + $0xa18] sm:$0xff] }
  0xaa   :  { %1206 = vmatprep.subr.mxu1 %v578_v15  ;;  %1136 = vmatpush2.msra.mxu0 %v513_v18  ;;  %v677_v15 = vld [vmem:[#allocation5 + $0xa20] sm:$0xff]  ;;  %v611_v18 = vld [vmem:[#allocation5 + $0x810] sm:$0xff] }
  0xab   :  { %1137 = vmatprep.mubr.f32.mxu0 %v904_v19  ;;  %1207 = vmatpush2.msra.mxu1 %v577_v20  ;;  %v675_v19 = vld [vmem:[#allocation5 + $0xa10] sm:$0xff]  ;;  %v610_v20 = vld [vmem:[#allocation5 + $0x808] sm:$0xff] }
  0xac   :  { %1138 = vmatmul.mubr.f32.vlgmr.msra.gmra.mxu0 %v903_v21  ;;  %1208 = vmatprep.mubr.f32.mxu1 %v906_v22  ;;  %v674_v21 = vld [vmem:[#allocation5 + $0xa08] sm:$0xff]  ;;  %v609_v22 = vld [vmem:[#allocation5 + $0x800] sm:$0xff] }
  0xad   :  { %1215 = vmatprep.subr.mxu0 %v640_v23  ;;  %1286 = vmatprep.subr.mxu1 %v704_v24  ;;  %v673_v23 = vld [vmem:[#allocation5 + $0xa00] sm:$0xff]  ;;  %v672_v24 = vld [vmem:[#allocation5 + $0x9f8] sm:$0xff] }
  0xae   :  { %1209 = vmatmul.mubr.f32.vlgmr.msra.gmra.mxu1 %v905_v25  ;;  %1216 = vmatpush1.msra.mxu0 %v639_v26  ;;  %v736_v25 = vld [vmem:[#allocation5 + $0xbf8] sm:$0xff]  ;;  %v68_v26 = vld [vmem:[#allocation2 + $0x48] sm:$0xff] }
  0xaf   :  { %1287 = vmatpush1.msra.mxu1 %v703_v27  ;;  %1217 = vmatprep.subr.mxu0 %v638_v28  ;;  %v671_v27 = vld [vmem:[#allocation5 + $0x9f0] sm:$0xff] }
  0xb0   :  { %1288 = vmatprep.subr.mxu1 %v702_v29  ;;  %1218 = vmatpush1.msra.mxu0 %v637_v30  ;;  %v735_v28 = vld [vmem:[#allocation5 + $0xbf0] sm:$0xff]  ;;  %v84_v29 = vld [vmem:[#allocation2 + $0xc8] sm:$0xff] }
  0xb1   :  { %1289 = vmatpush1.msra.mxu1 %v701_v31  ;;  %1219 = vmatprep.subr.mxu0 %v636_v32  ;;  %v100_v30 = vld [vmem:[#allocation2 + $0x148] sm:$0xff] }
  0xb2   :  { %1290 = vmatprep.subr.mxu1 %v700_v33  ;;  %1220 = vmatpush1.msra.mxu0 %v635_v34  ;;  %v116_v31 = vld [vmem:[#allocation2 + $0x1c8] sm:$0xff]  ;;  %v67_v34 = vld [vmem:[#allocation2 + $0x40] sm:$0xff] }
  0xb3   :  { %1291 = vmatpush1.msra.mxu1 %v699_v35  ;;  %1221 = vmatprep.subr.mxu0 %v634_v36  ;;  %v670_v32 = vld [vmem:[#allocation5 + $0x9e8] sm:$0xff]  ;;  %v83_v35 = vld [vmem:[#allocation2 + $0xc0] sm:$0xff] }
  0xb4   :  { %1292 = vmatprep.subr.mxu1 %v698_v37  ;;  %1222 = vmatpush1.msra.mxu0 %v633_v38  ;;  %v734_v33 = vld [vmem:[#allocation5 + $0xbe8] sm:$0xff]  ;;  %v99_v36 = vld [vmem:[#allocation2 + $0x140] sm:$0xff] }
  0xb5   :  { %1293 = vmatpush1.msra.mxu1 %v697_v39  ;;  %1223 = vmatprep.subr.mxu0 %v632_v40  ;;  %v669_v37 = vld [vmem:[#allocation5 + $0x9e0] sm:$0xff]  ;;  %v70_v40 = vld [vmem:[#allocation2 + $0x58] sm:$0xff] }
  0xb6   :  { %1294 = vmatprep.subr.mxu1 %v696_v41  ;;  %1224 = vmatpush1.msra.mxu0 %v631_v42  ;;  %v733_v38 = vld [vmem:[#allocation5 + $0xbe0] sm:$0xff]  ;;  %v86_v41 = vld [vmem:[#allocation2 + $0xd8] sm:$0xff] }
  0xb7   :  { %1295 = vmatpush1.msra.mxu1 %v695_v43  ;;  %1225 = vmatprep.subr.mxu0 %v630_v44  ;;  %v115_v39 = vld [vmem:[#allocation2 + $0x1c0] sm:$0xff]  ;;  %v102_v42 = vld [vmem:[#allocation2 + $0x158] sm:$0xff]  ;;  %v69_v44 = vld [vmem:[#allocation2 + $0x50] sm:$0xff] }
  0xb8   :  { %1296 = vmatprep.subr.mxu1 %v694_v45  ;;  %1226 = vmatpush1.msra.mxu0 %v629_v46  ;;  %v118_v43 = vld [vmem:[#allocation2 + $0x1d8] sm:$0xff]  ;;  %v186_v45 = vmax.f32 %v68_v26, %v84_v29  ;;  %v298_v46 = vmax.f32 %v100_v30, %v116_v31  ;;  %v658_v26 = vld [vmem:[#allocation5 + $0x988] sm:$0xff]  ;;  %v657_v30 = vld [vmem:[#allocation5 + $0x980] sm:$0xff] }
  0xb9   :  { %1297 = vmatpush1.msra.mxu1 %v693_v47  ;;  %1227 = vmatprep.subr.mxu0 %v628_v48  ;;  %v85_v47 = vld [vmem:[#allocation2 + $0xd0] sm:$0xff]  ;;  %v721_v31 = vld [vmem:[#allocation5 + $0xb80] sm:$0xff] }
  0xba   :  { %1298 = vmatprep.subr.mxu1 %v692_v49  ;;  %1228 = vmatpush1.msra.mxu0 %v627_v50  ;;  %v101_v48 = vld [vmem:[#allocation2 + $0x150] sm:$0xff]  ;;  %v668_v50 = vld [vmem:[#allocation5 + $0x9d8] sm:$0xff] }
  0xbb   :  { %1299 = vmatpush1.msra.mxu1 %v691_v51  ;;  %1229 = vmatprep.subr.mxu0 %v626_v52  ;;  %v117_v49 = vld [vmem:[#allocation2 + $0x1d0] sm:$0xff]  ;;  %v732_v51 = vld [vmem:[#allocation5 + $0xbd8] sm:$0xff]  ;;  %v179_v52 = vmax.f32 %v67_v34, %v83_v35 }
  0xbc   :  { %1300 = vmatprep.subr.mxu1 %v690_v53  ;;  %1230 = vmatpush1.msra.mxu0 %v625_v54  ;;  %v291_v53 = vmax.f32 %v99_v36, %v115_v39  ;;  %v667_v54 = vld [vmem:[#allocation5 + $0x9d0] sm:$0xff]  ;;  %v656_v34 = vld [vmem:[#allocation5 + $0x978] sm:$0xff] }
  0xbd   :  { %1301 = vmatpush1.msra.mxu1 %v689_v55  ;;  %1231 = vmatprep.subr.mxu0 %v624_v56  ;;  %v731_v55 = vld [vmem:[#allocation5 + $0xbd0] sm:$0xff]  ;;  %v200_v56 = vmax.f32 %v70_v40, %v86_v41  ;;  %v720_v35 = vld [vmem:[#allocation5 + $0xb78] sm:$0xff] }
  0xbe   :  { %1302 = vmatprep.subr.mxu1 %v688_v57  ;;  %1232 = vmatpush1.msra.mxu0 %v623_v58  ;;  %v312_v57 = vmax.f32 %v102_v42, %v118_v43  ;;  %v666_v58 = vld [vmem:[#allocation5 + $0x9c8] sm:$0xff]  ;;  %v719_v39 = vld [vmem:[#allocation5 + $0xb70] sm:$0xff] }
  0xbf   :  { %1303 = vmatpush1.msra.mxu1 %v687_v59  ;;  %1233 = vmatprep.subr.mxu0 %v622_v60  ;;  %v730_v59 = vld [vmem:[#allocation5 + $0xbc8] sm:$0xff]  ;;  %v193_v60 = vmax.f32 %v69_v44, %v85_v47  ;;  %v717_v47 = vld [vmem:[#allocation5 + $0xb60] sm:$0xff] }
  0xc0   :  { %1304 = vmatprep.subr.mxu1 %v686_v61  ;;  %1234 = vmatpush1.msra.mxu0 %v621_v62  ;;  %v305_v61 = vmax.f32 %v101_v48, %v117_v49  ;;  %v665_v62 = vld [vmem:[#allocation5 + $0x9c0] sm:$0xff]  ;;  %v654_v42 = vld [vmem:[#allocation5 + $0x968] sm:$0xff] }
  0xc1   :  { %1305 = vmatpush1.msra.mxu1 %v685_v63  ;;  %1235 = vmatprep.subr.mxu0 %v620_v0  ;;  %v729_v63 = vld [vmem:[#allocation5 + $0xbc0] sm:$0xff]  ;;  %v187_v0 = vrot.slane %v186_v45, 4  ;;  %v718_v43 = vld [vmem:[#allocation5 + $0xb68] sm:$0xff] }
  0xc2   :  { %1306 = vmatprep.subr.mxu1 %v684_v1  ;;  %1236 = vmatpush1.msra.mxu0 %v619_v2  ;;  %v299_v1 = vrot.slane %v298_v46, 4  ;;  %v664_v2 = vld [vmem:[#allocation5 + $0x9b8] sm:$0xff] }
  0xc3   :  { %1307 = vmatpush1.msra.mxu1 %v683_v3  ;;  %1237 = vmatprep.subr.mxu0 %v618_v4  ;;  %v728_v3 = vld [vmem:[#allocation5 + $0xbb8] sm:$0xff]  ;;  %v180_v4 = vrot.slane %v179_v52, 4 }
  0xc4   :  { %1308 = vmatprep.subr.mxu1 %v682_v5  ;;  %1238 = vmatpush1.msra.mxu0 %v617_v6  ;;  %v292_v5 = vrot.slane %v291_v53, 4  ;;  %v663_v6 = vld [vmem:[#allocation5 + $0x9b0] sm:$0xff] }
  0xc5   :  { %1309 = vmatpush1.msra.mxu1 %v681_v7  ;;  %1239 = vmatprep.subr.mxu0 %v616_v8  ;;  %v727_v7 = vld [vmem:[#allocation5 + $0xbb0] sm:$0xff]  ;;  %v201_v8 = vrot.slane %v200_v56, 4 }
  0xc6   :  { %1310 = vmatprep.subr.mxu1 %v680_v9  ;;  %1240 = vmatpush1.msra.mxu0 %v615_v10  ;;  %v313_v9 = vrot.slane %v312_v57, 4  ;;  %v662_v10 = vld [vmem:[#allocation5 + $0x9a8] sm:$0xff] }
  0xc7   :  { %1311 = vmatpush1.msra.mxu1 %v679_v11  ;;  %1241 = vmatprep.subr.mxu0 %v614_v12  ;;  %v726_v11 = vld [vmem:[#allocation5 + $0xba8] sm:$0xff]  ;;  %v194_v12 = vrot.slane %v193_v60, 4 }
  0xc8   :  { %1312 = vmatprep.subr.mxu1 %v678_v13  ;;  %1242 = vmatpush1.msra.mxu0 %v613_v14  ;;  %v306_v13 = vrot.slane %v305_v61, 4  ;;  %v661_v14 = vld [vmem:[#allocation5 + $0x9a0] sm:$0xff] }
  0xc9   :  { %1313 = vmatpush1.msra.mxu1 %v677_v15  ;;  %1243 = vmatprep.subr.mxu0 %v612_v16  ;;  %v725_v15 = vld [vmem:[#allocation5 + $0xba0] sm:$0xff]  ;;  %v188_v16 = vmax.f32 %v186_v45, %v187_v0 }
  0xca   :  { %1314 = vmatprep.subr.mxu1 %v676_v17  ;;  %1244 = vmatpush1.msra.mxu0 %v611_v18  ;;  %v300_v17 = vmax.f32 %v298_v46, %v299_v1  ;;  %v660_v18 = vld [vmem:[#allocation5 + $0x998] sm:$0xff]  ;;  %v307_v29 = vmax.f32 %v305_v61, %v306_v13  ;;  %v653_v46 = vld [vmem:[#allocation5 + $0x960] sm:$0xff] }
  0xcb   :  { %1315 = vmatpush1.msra.mxu1 %v675_v19  ;;  %1245 = vmatprep.subr.mxu0 %v610_v20  ;;  %v724_v19 = vld [vmem:[#allocation5 + $0xb98] sm:$0xff]  ;;  %v181_v20 = vmax.f32 %v179_v52, %v180_v4 }
  0xcc   :  { %1316 = vmatprep.subr.mxu1 %v674_v21  ;;  %1246 = vmatpush1.msra.mxu0 %v609_v22  ;;  %v293_v21 = vmax.f32 %v291_v53, %v292_v5  ;;  %v659_v22 = vld [vmem:[#allocation5 + $0x990] sm:$0xff]  ;;  %v308_v45 = vrot.slane %v307_v29, 2 }
  0xcd   :  { %1317 = vmatpush1.msra.mxu1 %v673_v23  ;;  %1247 = vmatprep.subr.mxu0 %v672_v24  ;;  %v723_v23 = vld [vmem:[#allocation5 + $0xb90] sm:$0xff]  ;;  %v202_v24 = vmax.f32 %v200_v56, %v201_v8  ;;  %v182_v36 = vrot.slane %v181_v20, 2 }
  0xce   :  { %1318 = vmatprep.subr.mxu1 %v736_v25  ;;  %1248 = vmatpush2.msra.mxu0 %v671_v27  ;;  %v314_v25 = vmax.f32 %v312_v57, %v313_v9  ;;  %v722_v27 = vld [vmem:[#allocation5 + $0xb88] sm:$0xff]  ;;  %v309_v61 = vmax.f32 %v307_v29, %v308_v45  ;;  %v828_v45 = vld [vmem:[#allocation5 + $0xed8] sm:$0xff] }
  0xcf   :  { %1319 = vmatpush2.msra.mxu1 %v735_v28  ;;  %1249 = vmatprep.subr.mxu0 %v670_v32  ;;  %v195_v28 = vmax.f32 %v193_v60, %v194_v12  ;;  %v189_v32 = vrot.slane %v188_v16, 2  ;;  %v203_v40 = vrot.slane %v202_v24, 2  ;;  %v183_v52 = vmax.f32 %v181_v20, %v182_v36  ;;  %v832_v36 = vld [vmem:[#allocation5 + $0xef8] sm:$0xff] }
  0xd0   :  { %1320 = vmatprep.subr.mxu1 %v734_v33  ;;  %1250 = vmatpush2.msra.mxu0 %v669_v37  ;;  %v301_v33 = vrot.slane %v300_v17, 2  ;;  %v294_v37 = vrot.slane %v293_v21, 2  ;;  %v315_v41 = vrot.slane %v314_v25, 2  ;;  %v310_v13 = vrot.slane %v309_v61, 1 }
  0xd1   :  { %1321 = vmatpush2.msra.mxu1 %v733_v38  ;;  %1251 = vmatprep.subr.mxu0 %v668_v50  ;;  %v655_v38 = vld [vmem:[#allocation5 + $0x970] sm:$0xff]  ;;  %v196_v44 = vrot.slane %v195_v28, 2  ;;  %v190_v48 = vmax.f32 %v188_v16, %v189_v32  ;;  %v652_v50 = vld [vmem:[#allocation5 + $0x958] sm:$0xff]  ;;  %v204_v56 = vmax.f32 %v202_v24, %v203_v40  ;;  %v184_v4 = vrot.slane %v183_v52, 1  ;;  %v705_v32 = vld [vmem:[#allocation5 + $0xb00] sm:$0xff] }
  0xd2   :  { %1322 = vmatprep.subr.mxu1 %v732_v51  ;;  %1252 = vmatpush2.msra.mxu0 %v667_v54  ;;  %v302_v49 = vmax.f32 %v300_v17, %v301_v33  ;;  %v716_v51 = vld [vmem:[#allocation5 + $0xb58] sm:$0xff]  ;;  %v295_v53 = vmax.f32 %v293_v21, %v294_v37  ;;  %v651_v54 = vld [vmem:[#allocation5 + $0x950] sm:$0xff]  ;;  %v316_v57 = vmax.f32 %v314_v25, %v315_v41  ;;  %v766_v40 = vld [vmem:[#allocation5 + $0xce8] sm:$0xff] }
  0xd3   :  { %1323 = vmatpush2.msra.mxu1 %v731_v55  ;;  %1253 = vmatprep.subr.mxu0 %v666_v58  ;;  %v715_v55 = vld [vmem:[#allocation5 + $0xb50] sm:$0xff]  ;;  %v650_v58 = vld [vmem:[#allocation5 + $0x948] sm:$0xff]  ;;  %v197_v60 = vmax.f32 %v195_v28, %v196_v44  ;;  %v191_v0 = vrot.slane %v190_v48, 1  ;;  %v205_v8 = vrot.slane %v204_v56, 1  ;;  %v185_v20 = vmax.f32 %v183_v52, %v184_v4  ;;  %v764_v44 = vld [vmem:[#allocation5 + $0xcd8] sm:$0xff] }
  0xd4   :  { %1324 = vmatprep.subr.mxu1 %v730_v59  ;;  %1254 = vmatpush2.msra.mxu0 %v665_v62  ;;  %v714_v59 = vld [vmem:[#allocation5 + $0xb48] sm:$0xff]  ;;  %v649_v62 = vld [vmem:[#allocation5 + $0x940] sm:$0xff]  ;;  %v303_v1 = vrot.slane %v302_v49, 1  ;;  %v296_v5 = vrot.slane %v295_v53, 1  ;;  %v317_v9 = vrot.slane %v316_v57, 1  ;;  %v311_v29 = vmax.f32 %v309_v61, %v310_v13  ;;  %v760_v52 = vld [vmem:[#allocation5 + $0xcb8] sm:$0xff] }
  0xd5   :  { %1325 = vmatpush2.msra.mxu1 %v729_v63  ;;  %1255 = vmatprep.subr.mxu0 %v664_v2  ;;  %v713_v63 = vld [vmem:[#allocation5 + $0xb40] sm:$0xff]  ;;  %v648_v2 = vld [vmem:[#allocation5 + $0x938] sm:$0xff]  ;;  %v198_v12 = vrot.slane %v197_v60, 1  ;;  %v192_v16 = vmax.f32 %v190_v48, %v191_v0  ;;  %v206_v24 = vmax.f32 %v204_v56, %v205_v8  ;;  %v830_v41 = vld [vmem:[#allocation5 + $0xee8] sm:$0xff] }
  0xd6   :  { %1326 = vmatprep.subr.mxu1 %v728_v3  ;;  %1256 = vmatpush2.msra.mxu0 %v663_v6  ;;  %v712_v3 = vld [vmem:[#allocation5 + $0xb38] sm:$0xff]  ;;  %v647_v6 = vld [vmem:[#allocation5 + $0x930] sm:$0xff]  ;;  %v304_v17 = vmax.f32 %v302_v49, %v303_v1  ;;  %v297_v21 = vmax.f32 %v295_v53, %v296_v5  ;;  %v318_v25 = vmax.f32 %v316_v57, %v317_v9  ;;  %v762_v48 = vld [vmem:[#allocation5 + $0xcc8] sm:$0xff] }
  0xd7   :  { %1327 = vmatpush2.msra.mxu1 %v727_v7  ;;  %1257 = vmatprep.subr.mxu0 %v662_v10  ;;  %v711_v7 = vld [vmem:[#allocation5 + $0xb30] sm:$0xff]  ;;  %v646_v10 = vld [vmem:[#allocation5 + $0x928] sm:$0xff]  ;;  %v199_v28 = vmax.f32 %v197_v60, %v198_v12  ;;  %v824_v53 = vld [vmem:[#allocation5 + $0xeb8] sm:$0xff] }
  0xd8   :  { %1328 = vmatprep.subr.mxu1 %v726_v11  ;;  %1258 = vmatpush2.msra.mxu0 %v661_v14  ;;  %v710_v11 = vld [vmem:[#allocation5 + $0xb28] sm:$0xff]  ;;  %v645_v14 = vld [vmem:[#allocation5 + $0x920] sm:$0xff]  ;;  %v907_v33 = vsel %vm898_vm0, %v297_v21, %v185_v20  ;;  %v756_v60 = vld [vmem:[#allocation5 + $0xc98] sm:$0xff] }
  0xd9   :  { %1329 = vmatpush2.msra.mxu1 %v725_v15  ;;  %1259 = vmatprep.subr.mxu0 %v660_v18  ;;  %v709_v15 = vld [vmem:[#allocation5 + $0xb20] sm:$0xff]  ;;  %v644_v18 = vld [vmem:[#allocation5 + $0x918] sm:$0xff]  ;;  %v909_v37 = vsel %vm898_vm0, %v311_v29, %v199_v28  ;;  %v826_v49 = vld [vmem:[#allocation5 + $0xec8] sm:$0xff] }
  0xda   :  { %1330 = vmatprep.subr.mxu1 %v724_v19  ;;  %1260 = vmatpush2.msra.mxu0 %v659_v22  ;;  %v708_v19 = vld [vmem:[#allocation5 + $0xb18] sm:$0xff]  ;;  %v643_v22 = vld [vmem:[#allocation5 + $0x910] sm:$0xff]  ;;  %v758_v56 = vld [vmem:[#allocation5 + $0xca8] sm:$0xff] }
  0xdb   :  { %1331 = vmatpush2.msra.mxu1 %v723_v23  ;;  %1261 = vmatprep.subr.mxu0 %v658_v26  ;;  %v707_v23 = vld [vmem:[#allocation5 + $0xb10] sm:$0xff]  ;;  %v642_v26 = vld [vmem:[#allocation5 + $0x908] sm:$0xff]  ;;  %v820_v61 = vld [vmem:[#allocation5 + $0xe98] sm:$0xff] }
  0xdc   :  { %1332 = vmatprep.subr.mxu1 %v722_v27  ;;  %1262 = vmatpush2.msra.mxu0 %v657_v30  ;;  %v706_v27 = vld [vmem:[#allocation5 + $0xb08] sm:$0xff]  ;;  %v641_v30 = vld [vmem:[#allocation5 + $0x900] sm:$0xff]  ;;  %v752_v4 = vld [vmem:[#allocation5 + $0xc78] sm:$0xff] }
  0xdd   :  { %1333 = vmatpush2.msra.mxu1 %v721_v31  ;;  %1263 = vmatprep.subr.mxu0 %v656_v34  ;;  %v908_v31 = vsel %vm898_vm0, %v304_v17, %v192_v16  ;;  %v910_v34 = vsel %vm898_vm0, %v318_v25, %v206_v24  ;;  %v822_v57 = vld [vmem:[#allocation5 + $0xea8] sm:$0xff]  ;;  %v816_v5 = vld [vmem:[#allocation5 + $0xe78] sm:$0xff] }
  0xde   :  { %1334 = vmatprep.subr.mxu1 %v720_v35  ;;  %1264 = vmatpush2.msra.mxu0 %v655_v38  ;;  %v768_v35 = vld [vmem:[#allocation5 + $0xcf8] sm:$0xff]  ;;  %v767_v38 = vld [vmem:[#allocation5 + $0xcf0] sm:$0xff]  ;;  %v754_v0 = vld [vmem:[#allocation5 + $0xc88] sm:$0xff] }
  0xdf   :  { %1335 = vmatpush2.msra.mxu1 %v719_v39  ;;  %1265 = vmatprep.subr.mxu0 %v654_v42  ;;  %v831_v39 = vld [vmem:[#allocation5 + $0xef0] sm:$0xff]  ;;  %v765_v42 = vld [vmem:[#allocation5 + $0xce0] sm:$0xff]  ;;  %v818_v1 = vld [vmem:[#allocation5 + $0xe88] sm:$0xff] }
  0xe0   :  { %1336 = vmatprep.subr.mxu1 %v718_v43  ;;  %1266 = vmatpush2.msra.mxu0 %v653_v46  ;;  %v829_v43 = vld [vmem:[#allocation5 + $0xee0] sm:$0xff]  ;;  %v763_v46 = vld [vmem:[#allocation5 + $0xcd0] sm:$0xff]  ;;  %v750_v8 = vld [vmem:[#allocation5 + $0xc68] sm:$0xff] }
  0xe1   :  { %1337 = vmatpush2.msra.mxu1 %v717_v47  ;;  %1267 = vmatprep.subr.mxu0 %v652_v50  ;;  %v827_v47 = vld [vmem:[#allocation5 + $0xed0] sm:$0xff]  ;;  %v761_v50 = vld [vmem:[#allocation5 + $0xcc0] sm:$0xff]  ;;  %v814_v9 = vld [vmem:[#allocation5 + $0xe68] sm:$0xff] }
  0xe2   :  { %1338 = vmatprep.subr.mxu1 %v716_v51  ;;  %1268 = vmatpush2.msra.mxu0 %v651_v54  ;;  %v825_v51 = vld [vmem:[#allocation5 + $0xec0] sm:$0xff]  ;;  %v759_v54 = vld [vmem:[#allocation5 + $0xcb0] sm:$0xff]  ;;  %v748_v12 = vld [vmem:[#allocation5 + $0xc58] sm:$0xff] }
  0xe3   :  { %1339 = vmatpush2.msra.mxu1 %v715_v55  ;;  %1269 = vmatprep.subr.mxu0 %v650_v58  ;;  %v823_v55 = vld [vmem:[#allocation5 + $0xeb0] sm:$0xff]  ;;  %v757_v58 = vld [vmem:[#allocation5 + $0xca0] sm:$0xff]  ;;  %v812_v13 = vld [vmem:[#allocation5 + $0xe58] sm:$0xff] }
  0xe4   :  { %1340 = vmatprep.subr.mxu1 %v714_v59  ;;  %1270 = vmatpush2.msra.mxu0 %v649_v62  ;;  %v821_v59 = vld [vmem:[#allocation5 + $0xea0] sm:$0xff]  ;;  %v755_v62 = vld [vmem:[#allocation5 + $0xc90] sm:$0xff]  ;;  %v746_v16 = vld [vmem:[#allocation5 + $0xc48] sm:$0xff] }
  0xe5   :  { %1341 = vmatpush2.msra.mxu1 %v713_v63  ;;  %1271 = vmatprep.subr.mxu0 %v648_v2  ;;  %v819_v63 = vld [vmem:[#allocation5 + $0xe90] sm:$0xff]  ;;  %v753_v2 = vld [vmem:[#allocation5 + $0xc80] sm:$0xff]  ;;  %v810_v17 = vld [vmem:[#allocation5 + $0xe48] sm:$0xff] }
  0xe6   :  { %1342 = vmatprep.subr.mxu1 %v712_v3  ;;  %1272 = vmatpush2.msra.mxu0 %v647_v6  ;;  %v817_v3 = vld [vmem:[#allocation5 + $0xe80] sm:$0xff]  ;;  %v751_v6 = vld [vmem:[#allocation5 + $0xc70] sm:$0xff]  ;;  %v744_v20 = vld [vmem:[#allocation5 + $0xc38] sm:$0xff] }
  0xe7   :  { %1343 = vmatpush2.msra.mxu1 %v711_v7  ;;  %1273 = vmatprep.subr.mxu0 %v646_v10  ;;  %v815_v7 = vld [vmem:[#allocation5 + $0xe70] sm:$0xff]  ;;  %v749_v10 = vld [vmem:[#allocation5 + $0xc60] sm:$0xff]  ;;  %v808_v21 = vld [vmem:[#allocation5 + $0xe38] sm:$0xff] }
  0xe8   :  { %1344 = vmatprep.subr.mxu1 %v710_v11  ;;  %1274 = vmatpush2.msra.mxu0 %v645_v14  ;;  %v813_v11 = vld [vmem:[#allocation5 + $0xe60] sm:$0xff]  ;;  %v747_v14 = vld [vmem:[#allocation5 + $0xc50] sm:$0xff]  ;;  %v742_v24 = vld [vmem:[#allocation5 + $0xc28] sm:$0xff] }
  0xe9   :  { %1345 = vmatpush2.msra.mxu1 %v709_v15  ;;  %1275 = vmatprep.subr.mxu0 %v644_v18  ;;  %v811_v15 = vld [vmem:[#allocation5 + $0xe50] sm:$0xff]  ;;  %v745_v18 = vld [vmem:[#allocation5 + $0xc40] sm:$0xff]  ;;  %v806_v25 = vld [vmem:[#allocation5 + $0xe28] sm:$0xff] }
  0xea   :  { %1346 = vmatprep.subr.mxu1 %v708_v19  ;;  %1276 = vmatpush2.msra.mxu0 %v643_v22  ;;  %v809_v19 = vld [vmem:[#allocation5 + $0xe40] sm:$0xff]  ;;  %v743_v22 = vld [vmem:[#allocation5 + $0xc30] sm:$0xff]  ;;  %v740_v28 = vld [vmem:[#allocation5 + $0xc18] sm:$0xff] }
  0xeb   :  { %1347 = vmatpush2.msra.mxu1 %v707_v23  ;;  %1277 = vmatprep.subr.mxu0 %v642_v26  ;;  %v807_v23 = vld [vmem:[#allocation5 + $0xe30] sm:$0xff]  ;;  %v741_v26 = vld [vmem:[#allocation5 + $0xc20] sm:$0xff]  ;;  %v804_v29 = vld [vmem:[#allocation5 + $0xe18] sm:$0xff] }
  0xec   :  { %1348 = vmatprep.subr.mxu1 %v706_v27  ;;  %1278 = vmatpush2.msra.mxu0 %v641_v30  ;;  %v805_v27 = vld [vmem:[#allocation5 + $0xe20] sm:$0xff]  ;;  %v739_v30 = vld [vmem:[#allocation5 + $0xc10] sm:$0xff] }
  0xed   :  { %1279 = vmatprep.mubr.f32.mxu0 %v908_v31  ;;  %1349 = vmatpush2.msra.mxu1 %v705_v32  ;;  %v803_v31 = vld [vmem:[#allocation5 + $0xe10] sm:$0xff]  ;;  %v738_v32 = vld [vmem:[#allocation5 + $0xc08] sm:$0xff] }
  0xee   :  { %1280 = vmatmul.mubr.f32.vlgmr.msra.gmra.mxu0 %v907_v33  ;;  %1350 = vmatprep.mubr.f32.mxu1 %v910_v34  ;;  %v802_v33 = vld [vmem:[#allocation5 + $0xe08] sm:$0xff]  ;;  %v737_v34 = vld [vmem:[#allocation5 + $0xc00] sm:$0xff] }
  0xef   :  { %1357 = vmatprep.subr.mxu0 %v768_v35  ;;  %1428 = vmatprep.subr.mxu1 %v832_v36  ;;  %v801_v35 = vld [vmem:[#allocation5 + $0xe00] sm:$0xff]  ;;  %v800_v36 = vld [vmem:[#allocation5 + $0xdf8] sm:$0xff] }
  0xf0   :  { %1351 = vmatmul.mubr.f32.vlgmr.msra.gmra.mxu1 %v909_v37  ;;  %1358 = vmatpush1.msra.mxu0 %v767_v38  ;;  %v864_v37 = vld [vmem:[#allocation5 + $0xff8] sm:$0xff]  ;;  %v72_v38 = vld [vmem:[#allocation2 + $0x68] sm:$0xff] }
  0xf1   :  { %1429 = vmatpush1.msra.mxu1 %v831_v39  ;;  %1359 = vmatprep.subr.mxu0 %v766_v40  ;;  %v88_v39 = vld [vmem:[#allocation2 + $0xe8] sm:$0xff] }
  0xf2   :  { %1430 = vmatprep.subr.mxu1 %v830_v41  ;;  %1360 = vmatpush1.msra.mxu0 %v765_v42  ;;  %v104_v40 = vld [vmem:[#allocation2 + $0x168] sm:$0xff]  ;;  %v799_v42 = vld [vmem:[#allocation5 + $0xdf0] sm:$0xff] }
  0xf3   :  { %1431 = vmatpush1.msra.mxu1 %v829_v43  ;;  %1361 = vmatprep.subr.mxu0 %v764_v44  ;;  %v120_v41 = vld [vmem:[#allocation2 + $0x1e8] sm:$0xff]  ;;  %v863_v43 = vld [vmem:[#allocation5 + $0xff0] sm:$0xff]  ;;  %v74_v44 = vld [vmem:[#allocation2 + $0x78] sm:$0xff] }
  0xf4   :  { %1432 = vmatprep.subr.mxu1 %v828_v45  ;;  %1362 = vmatpush1.msra.mxu0 %v763_v46  ;;  %v90_v45 = vld [vmem:[#allocation2 + $0xf8] sm:$0xff] }
  0xf5   :  { %1433 = vmatpush1.msra.mxu1 %v827_v47  ;;  %1363 = vmatprep.subr.mxu0 %v762_v48  ;;  %v106_v46 = vld [vmem:[#allocation2 + $0x178] sm:$0xff]  ;;  %v798_v47 = vld [vmem:[#allocation5 + $0xde8] sm:$0xff] }
  0xf6   :  { %1434 = vmatprep.subr.mxu1 %v826_v49  ;;  %1364 = vmatpush1.msra.mxu0 %v761_v50  ;;  %v862_v48 = vld [vmem:[#allocation5 + $0xfe8] sm:$0xff]  ;;  %v122_v49 = vld [vmem:[#allocation2 + $0x1f8] sm:$0xff]  ;;  %v71_v50 = vld [vmem:[#allocation2 + $0x60] sm:$0xff] }
  0xf7   :  { %1435 = vmatpush1.msra.mxu1 %v825_v51  ;;  %1365 = vmatprep.subr.mxu0 %v760_v52  ;;  %v87_v51 = vld [vmem:[#allocation2 + $0xe0] sm:$0xff] }
  0xf8   :  { %1436 = vmatprep.subr.mxu1 %v824_v53  ;;  %1366 = vmatpush1.msra.mxu0 %v759_v54  ;;  %v103_v52 = vld [vmem:[#allocation2 + $0x160] sm:$0xff]  ;;  %v73_v54 = vld [vmem:[#allocation2 + $0x70] sm:$0xff] }
  0xf9   :  { %1437 = vmatpush1.msra.mxu1 %v823_v55  ;;  %1367 = vmatprep.subr.mxu0 %v758_v56  ;;  %v119_v53 = vld [vmem:[#allocation2 + $0x1e0] sm:$0xff]  ;;  %v89_v55 = vld [vmem:[#allocation2 + $0xf0] sm:$0xff] }
  0xfa   :  { %1438 = vmatprep.subr.mxu1 %v822_v57  ;;  %1368 = vmatpush1.msra.mxu0 %v757_v58  ;;  %v105_v56 = vld [vmem:[#allocation2 + $0x170] sm:$0xff]  ;;  %v797_v58 = vld [vmem:[#allocation5 + $0xde0] sm:$0xff] }
  0xfb   :  { %1439 = vmatpush1.msra.mxu1 %v821_v59  ;;  %1369 = vmatprep.subr.mxu0 %v756_v60  ;;  %v121_v57 = vld [vmem:[#allocation2 + $0x1f0] sm:$0xff]  ;;  %v861_v59 = vld [vmem:[#allocation5 + $0xfe0] sm:$0xff]  ;;  %v214_v60 = vmax.f32 %v72_v38, %v88_v39 }
  0xfc   :  { %1440 = vmatprep.subr.mxu1 %v820_v61  ;;  %1370 = vmatpush1.msra.mxu0 %v755_v62  ;;  %v326_v61 = vmax.f32 %v104_v40, %v120_v41  ;;  %v796_v62 = vld [vmem:[#allocation5 + $0xdd8] sm:$0xff]  ;;  %v786_v40 = vld [vmem:[#allocation5 + $0xd88] sm:$0xff] }
  0xfd   :  { %1441 = vmatpush1.msra.mxu1 %v819_v63  ;;  %1371 = vmatprep.subr.mxu0 %v754_v0  ;;  %v860_v63 = vld [vmem:[#allocation5 + $0xfd8] sm:$0xff]  ;;  %v228_v0 = vmax.f32 %v74_v44, %v90_v45  ;;  %v850_v41 = vld [vmem:[#allocation5 + $0xf88] sm:$0xff] }
  0xfe   :  { %1442 = vmatprep.subr.mxu1 %v818_v1  ;;  %1372 = vmatpush1.msra.mxu0 %v753_v2  ;;  %v340_v1 = vmax.f32 %v106_v46, %v122_v49  ;;  %v207_v2 = vmax.f32 %v71_v50, %v87_v51  ;;  %v784_v46 = vld [vmem:[#allocation5 + $0xd78] sm:$0xff]  ;;  %v783_v51 = vld [vmem:[#allocation5 + $0xd70] sm:$0xff] }
  0xff   :  { %1443 = vmatpush1.msra.mxu1 %v817_v3  ;;  %1373 = vmatprep.subr.mxu0 %v752_v4  ;;  %v795_v3 = vld [vmem:[#allocation5 + $0xdd0] sm:$0xff] }
 0x100   :  { %1444 = vmatprep.subr.mxu1 %v816_v5  ;;  %1374 = vmatpush1.msra.mxu0 %v751_v6  ;;  %v859_v4 = vld [vmem:[#allocation5 + $0xfd0] sm:$0xff]  ;;  %v319_v5 = vmax.f32 %v103_v52, %v119_v53  ;;  %v221_v6 = vmax.f32 %v73_v54, %v89_v55 }
 0x101   :  { %1445 = vmatpush1.msra.mxu1 %v815_v7  ;;  %1375 = vmatprep.subr.mxu0 %v750_v8  ;;  %v333_v7 = vmax.f32 %v105_v56, %v121_v57  ;;  %v794_v8 = vld [vmem:[#allocation5 + $0xdc8] sm:$0xff]  ;;  %v847_v52 = vld [vmem:[#allocation5 + $0xf70] sm:$0xff] }
 0x102   :  { %1446 = vmatprep.subr.mxu1 %v814_v9  ;;  %1376 = vmatpush1.msra.mxu0 %v749_v10  ;;  %v858_v9 = vld [vmem:[#allocation5 + $0xfc8] sm:$0xff]  ;;  %v793_v10 = vld [vmem:[#allocation5 + $0xdc0] sm:$0xff] }
 0x103   :  { %1447 = vmatpush1.msra.mxu1 %v813_v11  ;;  %1377 = vmatprep.subr.mxu0 %v748_v12  ;;  %v857_v11 = vld [vmem:[#allocation5 + $0xfc0] sm:$0xff]  ;;  %v215_v12 = vrot.slane %v214_v60, 4  ;;  %v782_v56 = vld [vmem:[#allocation5 + $0xd68] sm:$0xff] }
 0x104   :  { %1448 = vmatprep.subr.mxu1 %v812_v13  ;;  %1378 = vmatpush1.msra.mxu0 %v747_v14  ;;  %v327_v13 = vrot.slane %v326_v61, 4  ;;  %v792_v14 = vld [vmem:[#allocation5 + $0xdb8] sm:$0xff]  ;;  %v846_v57 = vld [vmem:[#allocation5 + $0xf68] sm:$0xff] }
 0x105   :  { %1449 = vmatpush1.msra.mxu1 %v811_v15  ;;  %1379 = vmatprep.subr.mxu0 %v746_v16  ;;  %v856_v15 = vld [vmem:[#allocation5 + $0xfb8] sm:$0xff]  ;;  %v229_v16 = vrot.slane %v228_v0, 4 }
 0x106   :  { %1450 = vmatprep.subr.mxu1 %v810_v17  ;;  %1380 = vmatpush1.msra.mxu0 %v745_v18  ;;  %v341_v17 = vrot.slane %v340_v1, 4  ;;  %v208_v18 = vrot.slane %v207_v2, 4 }
 0x107   :  { %1451 = vmatpush1.msra.mxu1 %v809_v19  ;;  %1381 = vmatprep.subr.mxu0 %v744_v20  ;;  %v791_v19 = vld [vmem:[#allocation5 + $0xdb0] sm:$0xff] }
 0x108   :  { %1452 = vmatprep.subr.mxu1 %v808_v21  ;;  %1382 = vmatpush1.msra.mxu0 %v743_v22  ;;  %v855_v20 = vld [vmem:[#allocation5 + $0xfb0] sm:$0xff]  ;;  %v320_v21 = vrot.slane %v319_v5, 4  ;;  %v222_v22 = vrot.slane %v221_v6, 4 }
 0x109   :  { %1453 = vmatpush1.msra.mxu1 %v807_v23  ;;  %1383 = vmatprep.subr.mxu0 %v742_v24  ;;  %v334_v23 = vrot.slane %v333_v7, 4  ;;  %v790_v24 = vld [vmem:[#allocation5 + $0xda8] sm:$0xff] }
 0x10a   :  { %1454 = vmatprep.subr.mxu1 %v806_v25  ;;  %1384 = vmatpush1.msra.mxu0 %v741_v26  ;;  %v854_v25 = vld [vmem:[#allocation5 + $0xfa8] sm:$0xff]  ;;  %v789_v26 = vld [vmem:[#allocation5 + $0xda0] sm:$0xff]  ;;  %v223_v38 = vmax.f32 %v221_v6, %v222_v22 }
 0x10b   :  { %1455 = vmatpush1.msra.mxu1 %v805_v27  ;;  %1385 = vmatprep.subr.mxu0 %v740_v28  ;;  %v853_v27 = vld [vmem:[#allocation5 + $0xfa0] sm:$0xff]  ;;  %v216_v28 = vmax.f32 %v214_v60, %v215_v12  ;;  %v335_v39 = vmax.f32 %v333_v7, %v334_v23 }
 0x10c   :  { %1456 = vmatprep.subr.mxu1 %v804_v29  ;;  %1386 = vmatpush1.msra.mxu0 %v739_v30  ;;  %v328_v29 = vmax.f32 %v326_v61, %v327_v13  ;;  %v788_v30 = vld [vmem:[#allocation5 + $0xd98] sm:$0xff]  ;;  %v224_v54 = vrot.slane %v223_v38, 2 }
 0x10d   :  { %1457 = vmatpush1.msra.mxu1 %v803_v31  ;;  %1387 = vmatprep.subr.mxu0 %v738_v32  ;;  %v852_v31 = vld [vmem:[#allocation5 + $0xf98] sm:$0xff]  ;;  %v230_v32 = vmax.f32 %v228_v0, %v229_v16  ;;  %v217_v44 = vrot.slane %v216_v28, 2  ;;  %v336_v55 = vrot.slane %v335_v39, 2 }
 0x10e   :  { %1458 = vmatprep.subr.mxu1 %v802_v33  ;;  %1388 = vmatpush1.msra.mxu0 %v737_v34  ;;  %v342_v33 = vmax.f32 %v340_v1, %v341_v17  ;;  %v209_v34 = vmax.f32 %v207_v2, %v208_v18  ;;  %v329_v45 = vrot.slane %v328_v29, 2  ;;  %v225_v6 = vmax.f32 %v223_v38, %v224_v54 }
 0x10f   :  { %1459 = vmatpush1.msra.mxu1 %v801_v35  ;;  %1389 = vmatprep.subr.mxu0 %v800_v36  ;;  %v787_v35 = vld [vmem:[#allocation5 + $0xd90] sm:$0xff]  ;;  %v218_v60 = vmax.f32 %v216_v28, %v217_v44  ;;  %v337_v7 = vmax.f32 %v335_v39, %v336_v55  ;;  %v833_v44 = vld [vmem:[#allocation5 + $0xf00] sm:$0xff] }
 0x110   :  { %1460 = vmatprep.subr.mxu1 %v864_v37  ;;  %1390 = vmatpush2.msra.mxu0 %v799_v42  ;;  %v851_v36 = vld [vmem:[#allocation5 + $0xf90] sm:$0xff]  ;;  %v321_v37 = vmax.f32 %v319_v5, %v320_v21  ;;  %v785_v42 = vld [vmem:[#allocation5 + $0xd80] sm:$0xff]  ;;  %v343_v49 = vrot.slane %v342_v33, 2  ;;  %v210_v50 = vrot.slane %v209_v34, 2  ;;  %v330_v61 = vmax.f32 %v328_v29, %v329_v45 }
 0x111   :  { %1461 = vmatpush2.msra.mxu1 %v863_v43  ;;  %1391 = vmatprep.subr.mxu0 %v798_v47  ;;  %v849_v43 = vld [vmem:[#allocation5 + $0xf80] sm:$0xff]  ;;  %v848_v47 = vld [vmem:[#allocation5 + $0xf78] sm:$0xff]  ;;  %v219_v12 = vrot.slane %v218_v60, 1  ;;  %v226_v22 = vrot.slane %v225_v6, 1  ;;  %v338_v23 = vrot.slane %v337_v7, 1 }
 0x112   :  { %1462 = vmatprep.subr.mxu1 %v862_v48  ;;  %1392 = vmatpush2.msra.mxu0 %v797_v58  ;;  %v231_v48 = vrot.slane %v230_v32, 2  ;;  %v322_v53 = vrot.slane %v321_v37, 2  ;;  %v781_v58 = vld [vmem:[#allocation5 + $0xd60] sm:$0xff]  ;;  %v344_v1 = vmax.f32 %v342_v33, %v343_v49  ;;  %v211_v2 = vmax.f32 %v209_v34, %v210_v50 }
 0x113   :  { %1463 = vmatpush2.msra.mxu1 %v861_v59  ;;  %1393 = vmatprep.subr.mxu0 %v796_v62  ;;  %v845_v59 = vld [vmem:[#allocation5 + $0xf60] sm:$0xff]  ;;  %v780_v62 = vld [vmem:[#allocation5 + $0xd58] sm:$0xff]  ;;  %v331_v13 = vrot.slane %v330_v61, 1  ;;  %v220_v28 = vmax.f32 %v218_v60, %v219_v12  ;;  %v227_v38 = vmax.f32 %v225_v6, %v226_v22  ;;  %v339_v39 = vmax.f32 %v337_v7, %v338_v23 }
 0x114   :  { %1464 = vmatprep.subr.mxu1 %v860_v63  ;;  %1394 = vmatpush2.msra.mxu0 %v795_v3  ;;  %v844_v63 = vld [vmem:[#allocation5 + $0xf58] sm:$0xff]  ;;  %v232_v0 = vmax.f32 %v230_v32, %v231_v48  ;;  %v779_v3 = vld [vmem:[#allocation5 + $0xd50] sm:$0xff]  ;;  %v323_v5 = vmax.f32 %v321_v37, %v322_v53  ;;  %v345_v17 = vrot.slane %v344_v1, 1  ;;  %v212_v18 = vrot.slane %v211_v2, 1  ;;  %v1516_v23 = vld [vmem:[#allocation7] sm:$0x3] }
 0x115   :  { %1465 = vmatpush2.msra.mxu1 %v859_v4  ;;  %1395 = vmatprep.subr.mxu0 %v794_v8  ;;  %v843_v4 = vld [vmem:[#allocation5 + $0xf50] sm:$0xff]  ;;  %v778_v8 = vld [vmem:[#allocation5 + $0xd48] sm:$0xff]  ;;  %v332_v29 = vmax.f32 %v330_v61, %v331_v13  ;;  %v1658_v48 = vmov 0.0  }
 0x116   :  { %1466 = vmatprep.subr.mxu1 %v858_v9  ;;  %1396 = vmatpush2.msra.mxu0 %v793_v10  ;;  %v842_v9 = vld [vmem:[#allocation5 + $0xf48] sm:$0xff]  ;;  %v777_v10 = vld [vmem:[#allocation5 + $0xd40] sm:$0xff]  ;;  %v233_v16 = vrot.slane %v232_v0, 1  ;;  %v324_v21 = vrot.slane %v323_v5, 1  ;;  %v346_v33 = vmax.f32 %v344_v1, %v345_v17  ;;  %v213_v34 = vmax.f32 %v211_v2, %v212_v18  ;;  %58 = vst [vmem:[#allocation8] sm:$0xf] %v1658_v48 }
 0x117   :  { %1467 = vmatpush2.msra.mxu1 %v857_v11  ;;  %1397 = vmatprep.subr.mxu0 %v792_v14  ;;  %v841_v11 = vld [vmem:[#allocation5 + $0xf40] sm:$0xff]  ;;  %v776_v14 = vld [vmem:[#allocation5 + $0xd38] sm:$0xff] }
 0x118   :  { %1468 = vmatprep.subr.mxu1 %v856_v15  ;;  %1398 = vmatpush2.msra.mxu0 %v791_v19  ;;  %v840_v15 = vld [vmem:[#allocation5 + $0xf38] sm:$0xff]  ;;  %v775_v19 = vld [vmem:[#allocation5 + $0xd30] sm:$0xff]  ;;  %v234_v32 = vmax.f32 %v232_v0, %v233_v16  ;;  %v325_v37 = vmax.f32 %v323_v5, %v324_v21  ;;  %v1505_v5 = vlaneseq }
 0x119   :  { %1469 = vmatpush2.msra.mxu1 %v855_v20  ;;  %1399 = vmatprep.subr.mxu0 %v790_v24  ;;  %v839_v20 = vld [vmem:[#allocation5 + $0xf30] sm:$0xff]  ;;  %v774_v24 = vld [vmem:[#allocation5 + $0xd28] sm:$0xff] }
 0x11a   :  { %1470 = vmatprep.subr.mxu1 %v854_v25  ;;  %1400 = vmatpush2.msra.mxu0 %v789_v26  ;;  %v838_v25 = vld [vmem:[#allocation5 + $0xf28] sm:$0xff]  ;;  %v773_v26 = vld [vmem:[#allocation5 + $0xd20] sm:$0xff]  ;;  %v914_v45 = vsel %vm898_vm0, %v346_v33, %v234_v32  ;;  %v1506_v12 = vshrl.u32 %v1505_v5, 7 }
 0x11b   :  { %1471 = vmatpush2.msra.mxu1 %v853_v27  ;;  %1401 = vmatprep.subr.mxu0 %v788_v30  ;;  %v837_v27 = vld [vmem:[#allocation5 + $0xf20] sm:$0xff]  ;;  %v772_v30 = vld [vmem:[#allocation5 + $0xd18] sm:$0xff] }
 0x11c   :  { %1472 = vmatprep.subr.mxu1 %v852_v31  ;;  %1402 = vmatpush2.msra.mxu0 %v787_v35  ;;  %v836_v31 = vld [vmem:[#allocation5 + $0xf18] sm:$0xff]  ;;  %v771_v35 = vld [vmem:[#allocation5 + $0xd10] sm:$0xff]  ;;  %v1520_v21 = vsub.s32 0, %v1506_v12  ;;  %v1524_v22 = vsub.s32 1, %v1506_v12 }
 0x11d   :  { %1473 = vmatpush2.msra.mxu1 %v851_v36  ;;  %1403 = vmatprep.subr.mxu0 %v786_v40  ;;  %v835_v36 = vld [vmem:[#allocation5 + $0xf10] sm:$0xff]  ;;  %v770_v40 = vld [vmem:[#allocation5 + $0xd08] sm:$0xff] }
 0x11e   :  { %1474 = vmatprep.subr.mxu1 %v850_v41  ;;  %1404 = vmatpush2.msra.mxu0 %v785_v42  ;;  %v834_v41 = vld [vmem:[#allocation5 + $0xf08] sm:$0xff]  ;;  %v769_v42 = vld [vmem:[#allocation5 + $0xd00] sm:$0xff] }
 0x11f   :  { %1475 = vmatpush2.msra.mxu1 %v849_v43  ;;  %1405 = vmatprep.subr.mxu0 %v784_v46  ;;  %v912_v43 = vsel %vm898_vm0, %v332_v29, %v220_v28  ;;  %v911_v46 = vsel %vm898_vm0, %v325_v37, %v213_v34  ;;  %v1525_v28 = vrot.slane %v1516_v23, %v1524_v22 }
 0x120   :  { %1476 = vmatprep.subr.mxu1 %v848_v47  ;;  %1406 = vmatpush2.msra.mxu0 %v783_v51  ;;  %v913_v47 = vsel %vm898_vm0, %v339_v39, %v227_v38 }
 0x121   :  { %1477 = vmatpush2.msra.mxu1 %v847_v52  ;;  %1407 = vmatprep.subr.mxu0 %v782_v56 }
 0x122   :  { %1478 = vmatprep.subr.mxu1 %v846_v57  ;;  %1408 = vmatpush2.msra.mxu0 %v781_v58 }
 0x123   :  { %1479 = vmatpush2.msra.mxu1 %v845_v59  ;;  %1409 = vmatprep.subr.mxu0 %v780_v62 }
 0x124   :  { %1480 = vmatprep.subr.mxu1 %v844_v63  ;;  %1410 = vmatpush2.msra.mxu0 %v779_v3  ;;  %v1659_v3 = vmov 1983009808  }
 0x125   :  { %1481 = vmatpush2.msra.mxu1 %v843_v4  ;;  %1411 = vmatprep.subr.mxu0 %v778_v8  ;;  %v1503_v4 = vunpack.c.l.s4 %v1659_v3 }
 0x126   :  { %1482 = vmatprep.subr.mxu1 %v842_v9  ;;  %1412 = vmatpush2.msra.mxu0 %v777_v10 }
 0x127   :  { %1483 = vmatpush2.msra.mxu1 %v841_v11  ;;  %1413 = vmatprep.subr.mxu0 %v776_v14  ;;  %v1504_v11 = vunpack.c.0.s8 %v1503_v4 }
 0x128   :  { %1484 = vmatprep.subr.mxu1 %v840_v15  ;;  %1414 = vmatpush2.msra.mxu0 %v775_v19 }
 0x129   :  { %1485 = vmatpush2.msra.mxu1 %v839_v20  ;;  %1415 = vmatprep.subr.mxu0 %v774_v24  ;;  %v1507_v18 = vsub.s32 %v1504_v11, %v1506_v12 }
 0x12a   :  { %1486 = vmatprep.subr.mxu1 %v838_v25  ;;  %1416 = vmatpush2.msra.mxu0 %v773_v26  ;;  %v997_v49 = vpop.f32.mrf.mxu0  ;;  %v865_v25 = vld [vmem:[#allocation8] sm:$0xf] }
 0x12b   :  { %1487 = vmatpush2.msra.mxu1 %v837_v27  ;;  %1417 = vmatprep.subr.mxu0 %v772_v30  ;;  %v1068_v50 = vpop.f32.mrf.mxu1  ;;  %v1521_v27 = vrot.slane %v1516_v23, %v1520_v21 }
 0x12c   :  { %1488 = vmatprep.subr.mxu1 %v836_v31  ;;  %1418 = vmatpush2.msra.mxu0 %v771_v35  ;;  %v999_v51 = vpop.f32.mrf.mxu0  ;;  %v1069_v54 = vadd.f32 %v1068_v50, %v997_v49 }
 0x12d   :  { %1489 = vmatpush2.msra.mxu1 %v835_v36  ;;  %1419 = vmatprep.subr.mxu0 %v770_v40  ;;  %v1070_v53 = vpop.f32.mrf.mxu1  ;;  %v1526_v30 = vcombine.low %v1521_v27, %v1525_v28 }
 0x12e   :  { %1490 = vmatprep.subr.mxu1 %v834_v41  ;;  %1420 = vmatpush2.msra.mxu0 %v769_v42  ;;  %v1071_v57 = vadd.f32 %v1070_v53, %v999_v51 }
 0x12f   :  { %1421 = vmatprep.mubr.f32.mxu0 %v912_v43  ;;  %1491 = vmatpush2.msra.mxu1 %v833_v44  ;;  %v1533_v31 = vrot.slane %v1526_v30, %v1507_v18 }
 0x130   :  { %1492 = vmatprep.mubr.f32.mxu1 %v914_v45  ;;  %1422 = vmatmul.mubr.f32.vlgmr.msra.gmra.mxu0 %v911_v46 }
 0x131   :  { %1493 = vmatmul.mubr.f32.vlgmr.msra.gmra.mxu1 %v913_v47 }
 0x16c   :  { %v1139_v52 = vpop.f32.mrf.mxu0 }
 0x16d   :  { %v1140_v58 = vadd.f32 %v1139_v52, %v1069_v54 }
 0x16e   :  { %v1210_v55 = vpop.f32.mrf.mxu1  ;;  %v1141_v56 = vpop.f32.mrf.mxu0 }
 0x16f   :  { %v1142_v60 = vadd.f32 %v1141_v56, %v1071_v57  ;;  %v1211_v62 = vadd.f32 %v1210_v55, %v1140_v58 }
 0x170   :  { %v1212_v61 = vpop.f32.mrf.mxu1 }
 0x171   :  { %v1213_v1 = vadd.f32 %v1212_v61, %v1142_v60 }
 0x1ae   :  { %v1281_v59 = vpop.f32.mrf.mxu0 }
 0x1af   :  { %v1282_v2 = vadd.f32 %v1281_v59, %v1211_v62 }
 0x1b0   :  { %v1352_v63 = vpop.f32.mrf.mxu1  ;;  %v1283_v0 = vpop.f32.mrf.mxu0 }
 0x1b1   :  { %v1284_v6 = vadd.f32 %v1283_v0, %v1213_v1  ;;  %v1353_v8 = vadd.f32 %v1352_v63, %v1282_v2 }
 0x1b2   :  { %v1354_v7 = vpop.f32.mrf.mxu1 }
 0x1b3   :  { %v1355_v13 = vadd.f32 %v1354_v7, %v1284_v6 }
 0x1f0   :  { %v1423_v9 = vpop.f32.mrf.mxu0 }
 0x1f1   :  { %v1494_v10 = vpop.f32.mrf.mxu1  ;;  %v1424_v14 = vadd.f32 %v1423_v9, %v1353_v8 }
 0x1f2   :  { %v1425_v15 = vpop.f32.mrf.mxu0 }
 0x1f3   :  { %v1426_v16 = vadd.f32 %v1425_v15, %v1355_v13  ;;  %v1496_v17 = vpop.f32.mrf.mxu1  ;;  %v1495_v19 = vadd.f32 %v1494_v10, %v1424_v14 }
 0x1f5   :  { %v1497_v20 = vadd.f32 %v1496_v17, %v1426_v16 }
 0x1f7   :  { %v1501_v24 = vcombine.low %v1495_v19, %v1497_v20 }
 0x1f9   :  { %v1508_v26 = vrot.slane %v1501_v24, %v1507_v18 }
 0x1fb   :  { %v1510_v29 = vadd.f32 %v1508_v26, %v865_v25 }
 0x1fd   :  { %1511 = vst [vmem:[#allocation8] sm:$0xf] %v1510_v29 }
 0x204   :  { %v1515_v32 = vld [vmem:[#allocation8] sm:$0xf] }
 0x205   :  { %v1535_v33 = vadd.f32 %v1533_v31, %v1515_v32 }
 0x207   :  { %1536 = vst [vmem:[#allocation8] sm:$0xf] %v1535_v33 }
 0x208   :  { %1636 = shalt.err (!%p1633_p5)
}
 0x209   :  { %1546 = dma.vmem_to_hbm [thread:$0]  %s1544_s2, 64, %s1712_s3, [#allocation4]  }
 0x20a   :  { %1649 = dma.done.wait [#allocation4], 64  }
 0x20b   :  { %1650 = vsyncadd [#allocation4], 4294967232 }
 0x20c   :  { %1550 = vsyncpa [#allocation3], 1 }
 0x20d   :  { %1551 = vsyncpa [#allocation6], 1 }
 0x20e   :  { %1552 = vsyncpa [#allocation4], 1 }

</bundles_post_ra>
